<compile_context>
chip_gen: v6e
topology: v6e:2x2x1
jax: 0.10.0
libtpu: 0.0.40
codegen_flags: <defaults>
</compile_context>

<pallas_src>
import jax
import jax.numpy as jnp
from jax.experimental import pallas as pl
from jax.experimental.pallas import tpu as pltpu


def _round_up(x, m):
    return ((x + m - 1) // m) * m


# ----------------------------------------------------------------------------
# Kernel 1:  xw = ((dinv * x) @ Wg)  (bf16 output, tiled over node rows)
# ----------------------------------------------------------------------------
def _xw_kernel(x_ref, dinv_ref, wg_ref, xw_ref):
    xs = (x_ref[...] * dinv_ref[...]).astype(jnp.bfloat16)
    xw_ref[...] = jnp.dot(
        xs, wg_ref[...], preferred_element_type=jnp.float32
    ).astype(xw_ref.dtype)


# ----------------------------------------------------------------------------
# Kernel 2:  h   = relu(dinv * (A @ xw) + bg)     (GCN aggregation -> emb)
#            out = relu(h @ W1 + b1) @ W2 + b2    (fused MLP head)
# ----------------------------------------------------------------------------
def _gcn_mlp_kernel(a_ref, xw_ref, dinv_ref, bg_ref,
                    w1_ref, b1_ref, w2_ref, b2_ref,
                    emb_ref, out_ref, acc_ref):
    k = pl.program_id(1)

    @pl.when(k == 0)
    def _():
        acc_ref[...] = jnp.zeros_like(acc_ref)

    # MXU: bf16 operands, f32 accumulation in VMEM scratch.
    acc_ref[...] += jnp.dot(a_ref[...], xw_ref[...],
                            preferred_element_type=jnp.float32)

    @pl.when(k == pl.num_programs(1) - 1)
    def _():
        # Left D^-1/2 row scale + bias + ReLU (f32 VPU epilogue).
        h = jnp.maximum(acc_ref[...] * dinv_ref[...] + bg_ref[...], 0.0)
        emb_ref[...] = h.astype(emb_ref.dtype)          # self.emb = x
        # Fused MLP head (weights resident in VMEM).
        z = jnp.dot(h.astype(jnp.bfloat16), w1_ref[...],
                    preferred_element_type=jnp.float32) + b1_ref[...]
        z = jnp.maximum(z, 0.0)
        y = jnp.dot(z.astype(jnp.bfloat16), w2_ref[...],
                    preferred_element_type=jnp.float32) + b2_ref[...]
        out_ref[...] = y.astype(out_ref.dtype)


# ----------------------------------------------------------------------------
# Wrapper: returns (out, emb) == (PretrainModel.forward, get_embedding)
# ----------------------------------------------------------------------------
def pretrain_model_forward(x, edge_index, params, *, tm=256, tk=512):
    n, f_in = x.shape
    wg, bg = params["wg"], params["bg"]
    w1, b1 = params["w1"], params["b1"]
    w2, b2 = params["w2"], params["b2"]
    hidden = wg.shape[1]
    mlp_hidden = w1.shape[1]
    out_dim = w2.shape[1]

    # Lane-dense padded sizes.
    n_pad = _round_up(n, max(tm, tk))
    f_pad = _round_up(f_in, 128)
    h_pad = _round_up(hidden, 128)
    m_pad = _round_up(mlp_hidden, 128)
    c_pad = _round_up(out_dim, 128)

    # ---- glue (plain JAX): raw A + I and dinv; NO dense N^2 scaling passes --
    src, dst = edge_index[0], edge_index[1]
    adj = jnp.zeros((n_pad, n_pad), jnp.float32).at[dst, src].add(1.0)
    adj = adj + jnp.eye(n_pad, dtype=jnp.float32)                  # self loops
    deg = jnp.sum(adj, axis=1)
    dinv = jnp.where(deg > 0, jax.lax.rsqrt(deg), 0.0).reshape(n_pad, 1)
    adj = adj.astype(jnp.bfloat16)        # halves the dominant N^2 HBM stream

    # Padded operands (zeros are mathematically inert; sliced off at the end).
    x_p = jnp.pad(x.astype(jnp.float32), ((0, n_pad - n), (0, f_pad - f_in)))
    wg_p = jnp.pad(wg, ((0, f_pad - f_in), (0, h_pad - hidden))).astype(jnp.bfloat16)
    bg_p = jnp.pad(bg.reshape(1, -1).astype(jnp.float32),
                   ((0, 0), (0, h_pad - hidden)))
    w1_p = jnp.pad(w1, ((0, h_pad - hidden), (0, m_pad - mlp_hidden))).astype(jnp.bfloat16)
    b1_p = jnp.pad(b1.reshape(1, -1).astype(jnp.float32),
                   ((0, 0), (0, m_pad - mlp_hidden)))
    w2_p = jnp.pad(w2, ((0, m_pad - mlp_hidden), (0, c_pad - out_dim))).astype(jnp.bfloat16)
    b2_p = jnp.pad(b2.reshape(1, -1).astype(jnp.float32),
                   ((0, 0), (0, c_pad - out_dim)))

    # ---- kernel 1: xw = (dinv * x) @ Wg --------------------------------------
    xw = pl.pallas_call(
        _xw_kernel,
        out_shape=jax.ShapeDtypeStruct((n_pad, h_pad), jnp.bfloat16),
        grid_spec=pltpu.PrefetchScalarGridSpec(
            num_scalar_prefetch=0,
            grid=(n_pad // tm,),
            in_specs=[pl.BlockSpec((tm, f_pad), lambda i: (i, 0)),
                      pl.BlockSpec((tm, 1), lambda i: (i, 0)),
                      pl.BlockSpec((f_pad, h_pad), lambda i: (0, 0))],
            out_specs=pl.BlockSpec((tm, h_pad), lambda i: (i, 0)),
        ),
        compiler_params=pltpu.CompilerParams(
            dimension_semantics=("parallel",),
            vmem_limit_bytes=32 * 1024 * 1024),
    )(x_p, dinv, wg_p)

    # ---- kernel 2: GCN aggregation + fused MLP head --------------------------
    emb_p, out_p = pl.pallas_call(
        _gcn_mlp_kernel,
        out_shape=(jax.ShapeDtypeStruct((n_pad, h_pad), jnp.float32),
                   jax.ShapeDtypeStruct((n_pad, c_pad), jnp.float32)),
        grid_spec=pltpu.PrefetchScalarGridSpec(
            num_scalar_prefetch=0,
            grid=(n_pad // tm, n_pad // tk),
            in_specs=[pl.BlockSpec((tm, tk), lambda i, k: (i, k)),        # A
                      pl.BlockSpec((tk, h_pad), lambda i, k: (k, 0)),     # xw
                      pl.BlockSpec((tm, 1), lambda i, k: (i, 0)),         # dinv
                      pl.BlockSpec((1, h_pad), lambda i, k: (0, 0)),      # bg
                      pl.BlockSpec((h_pad, m_pad), lambda i, k: (0, 0)),  # W1
                      pl.BlockSpec((1, m_pad), lambda i, k: (0, 0)),      # b1
                      pl.BlockSpec((m_pad, c_pad), lambda i, k: (0, 0)),  # W2
                      pl.BlockSpec((1, c_pad), lambda i, k: (0, 0))],     # b2
            out_specs=(pl.BlockSpec((tm, h_pad), lambda i, k: (i, 0)),    # emb
                       pl.BlockSpec((tm, c_pad), lambda i, k: (i, 0))),   # out
            scratch_shapes=[pltpu.VMEM((tm, h_pad), jnp.float32)],
        ),
        compiler_params=pltpu.CompilerParams(
            dimension_semantics=("parallel", "arbitrary"),
            vmem_limit_bytes=32 * 1024 * 1024),
    )(adj, xw, dinv, bg_p, w1_p, b1_p, w2_p, b2_p)

    # Slice off padding.
    return out_p[:n, :out_dim], emb_p[:n, :hidden]


# ----------------------------------------------------------------------------
# Pure-JAX f32 reference
# ----------------------------------------------------------------------------
def _reference(x, edge_index, params):
    n = x.shape[0]
    src, dst = edge_index[0], edge_index[1]
    adj = jnp.zeros((n, n), jnp.float32).at[dst, src].add(1.0)
    adj = adj + jnp.eye(n, dtype=jnp.float32)
    deg = jnp.sum(adj, axis=1)
    dinv = jnp.where(deg > 0, 1.0 / jnp.sqrt(deg), 0.0)
    a_hat = adj * dinv[:, None] * dinv[None, :]
    h = jnp.maximum(a_hat @ x @ params["wg"] + params["bg"].reshape(1, -1), 0.0)
    z = jnp.maximum(h @ params["w1"] + params["b1"].reshape(1, -1), 0.0)
    y = z @ params["w2"] + params["b2"].reshape(1, -1)
    return y, h


if __name__ == "__main__":
    key = jax.random.PRNGKey(0)
    n_nodes, in_dim, hidden, mlp_hidden, out_dim = 8, 16, 32, 32, 16

    k = jax.random.split(key, 8)
    x = jax.random.normal(k[0], (n_nodes, in_dim), jnp.float32)

    # Deterministic small graph: ring edges, both directions.
    src = jnp.arange(n_nodes, dtype=jnp.int32)
    dst = (src + 1) % n_nodes
    edge_index = jnp.stack([jnp.concatenate([src, dst]),
                            jnp.concatenate([dst, src])], axis=0)

    params = {
        "wg": jax.random.normal(k[1], (in_dim, hidden), jnp.float32) * 0.1,
        "bg": jax.random.normal(k[2], (hidden,), jnp.float32) * 0.1,
        "w1": jax.random.normal(k[3], (hidden, mlp_hidden), jnp.float32) * 0.1,
        "b1": jax.random.normal(k[4], (mlp_hidden,), jnp.float32) * 0.1,
        "w2": jax.random.normal(k[5], (mlp_hidden, out_dim), jnp.float32) * 0.1,
        "b2": jax.random.normal(k[6], (out_dim,), jnp.float32) * 0.1,
    }

    out, emb = jax.jit(pretrain_model_forward)(x, edge_index, params)
    jax.block_until_ready((out, emb))

    ref_out, ref_emb = _reference(x, edge_index, params)
    assert out.shape == ref_out.shape and emb.shape == ref_emb.shape
    # bf16 MXU operands -> modest tolerance vs full-f32 reference.
    assert jnp.allclose(emb, ref_emb, atol=3e-2, rtol=3e-2), "embedding mismatch"
    assert jnp.allclose(out, ref_out, atol=3e-2, rtol=3e-2), "output mismatch"
    print("KERNEL_OK")
</pallas_src>

<mosaic_0001>
module attributes {stable_mosaic.version = 11 : i64} {
  func.func private @main(%arg0: i32) attributes {dimension_semantics = [#tpu.dimension_semantics<core_parallel>], iteration_bounds = array<i64: 2>, tpu.core_type = #tpu.core_type<sc_scalar_subcore>, window_params = []} {
    return
  }
}

module attributes {stable_mosaic.version = 11 : i64} {
  func.func private @main(%arg0: i32) attributes {dimension_semantics = [#tpu.dimension_semantics<core_parallel>], iteration_bounds = array<i64: 2>, tpu.core_type = #tpu.core_type<sc_scalar_subcore>, window_params = []} {
    return
  }
}

module attributes {stable_mosaic.version = 11 : i64} {
  func.func @_xw_kernel(%arg0: i32, %arg1: memref<256x128xf32, #tpu.memory_space<vmem>>, %arg2: memref<256x1xf32, #tpu.memory_space<vmem>>, %arg3: memref<128x128xbf16, #tpu.memory_space<vmem>>, %arg4: memref<256x128xbf16, #tpu.memory_space<vmem>>) attributes {dimension_semantics = [#tpu.dimension_semantics<parallel>], iteration_bounds = array<i64: 2>, scalar_prefetch = 0 : i64, scratch_operands = 0 : i64, tpu.core_type = #tpu.core_type<tc>, window_params = [{transform_indices = @transform_0, window_bounds = array<i64: 256, 128>}, {transform_indices = @transform_1, window_bounds = array<i64: 256, 1>}, {pipeline_mode = #tpu.pipeline_mode<synchronous>, transform_indices = @transform_2, window_bounds = array<i64: 128, 128>}, {transform_indices = @transform_3, window_bounds = array<i64: 256, 128>}]} {
    %c0 = arith.constant 0 : index
    %c0_0 = arith.constant 0 : index
    %0 = vector.load %arg1[%c0, %c0_0] : memref<256x128xf32, #tpu.memory_space<vmem>>, vector<256x128xf32>
    %c0_1 = arith.constant 0 : index
    %c0_2 = arith.constant 0 : index
    %1 = vector.load %arg2[%c0_1, %c0_2] : memref<256x1xf32, #tpu.memory_space<vmem>>, vector<256x1xf32>
    %2 = vector.broadcast %1 : vector<256x1xf32> to vector<256x128xf32>
    %3 = arith.mulf %0, %2 : vector<256x128xf32>
    %4 = arith.truncf %3 : vector<256x128xf32> to vector<256x128xbf16>
    %c0_3 = arith.constant 0 : index
    %c0_4 = arith.constant 0 : index
    %5 = vector.load %arg3[%c0_3, %c0_4] : memref<128x128xbf16, #tpu.memory_space<vmem>>, vector<128x128xbf16>
    %cst = arith.constant dense<0.000000e+00> : vector<256x128xf32>
    %6 = tpu.matmul %4, %5, %cst {dimension_numbers = #tpu.dot_dimension_numbers<[1], [0], [0], [1], [0, 0, 1, 1], [], []>} : vector<256x128xbf16>, vector<128x128xbf16>, vector<256x128xf32> -> vector<256x128xf32>
    %7 = arith.truncf %6 : vector<256x128xf32> to vector<256x128xbf16>
    %c0_5 = arith.constant 0 : index
    %c0_6 = arith.constant 0 : index
    %8 = vector.load %arg4[%c0_5, %c0_6] : memref<256x128xbf16, #tpu.memory_space<vmem>>, vector<256x128xbf16>
    tpu.vector_store %arg4[%c0_5, %c0_6], %7 {strides = array<i32>} : memref<256x128xbf16, #tpu.memory_space<vmem>>, vector<256x128xbf16>,
    return
  }
  func.func @transform_0(%arg0: i32) -> (i32, i32) {
    %c0_i32 = arith.constant 0 : i32
    %c0_i32_0 = arith.constant 0 : i32
    return %arg0, %c0_i32 : i32, i32
  }
  func.func @transform_1(%arg0: i32) -> (i32, i32) {
    %c0_i32 = arith.constant 0 : i32
    %c0_i32_0 = arith.constant 0 : i32
    return %arg0, %c0_i32 : i32, i32
  }
  func.func @transform_2(%arg0: i32) -> (i32, i32) {
    %c0_i32 = arith.constant 0 : i32
    %c0_i32_0 = arith.constant 0 : i32
    %c0_i32_1 = arith.constant 0 : i32
    return %c0_i32, %c0_i32_0 : i32, i32
  }
  func.func @transform_3(%arg0: i32) -> (i32, i32) {
    %c0_i32 = arith.constant 0 : i32
    %c0_i32_0 = arith.constant 0 : i32
    return %arg0, %c0_i32 : i32, i32
  }
}

module attributes {stable_mosaic.version = 11 : i64} {
  func.func @_gcn_mlp_kernel(%arg0: i32, %arg1: i32, %arg2: memref<256x512xbf16, #tpu.memory_space<vmem>>, %arg3: memref<512x128xbf16, #tpu.memory_space<vmem>>, %arg4: memref<256x1xf32, #tpu.memory_space<vmem>>, %arg5: memref<1x128xf32, #tpu.memory_space<vmem>>, %arg6: memref<128x128xbf16, #tpu.memory_space<vmem>>, %arg7: memref<1x128xf32, #tpu.memory_space<vmem>>, %arg8: memref<128x128xbf16, #tpu.memory_space<vmem>>, %arg9: memref<1x128xf32, #tpu.memory_space<vmem>>, %arg10: memref<256x128xf32, #tpu.memory_space<vmem>>, %arg11: memref<256x128xf32, #tpu.memory_space<vmem>>, %arg12: memref<256x128xf32, #tpu.memory_space<vmem>>) attributes {dimension_semantics = [#tpu.dimension_semantics<parallel>, #tpu.dimension_semantics<arbitrary>], iteration_bounds = array<i64: 2, 1>, scalar_prefetch = 0 : i64, scratch_operands = 1 : i64, tpu.core_type = #tpu.core_type<tc>, window_params = [{transform_indices = @transform_0, window_bounds = array<i64: 256, 512>}, {transform_indices = @transform_1, window_bounds = array<i64: 512, 128>}, {transform_indices = @transform_2, window_bounds = array<i64: 256, 1>}, {pipeline_mode = #tpu.pipeline_mode<synchronous>, transform_indices = @transform_3, window_bounds = array<i64: 1, 128>}, {pipeline_mode = #tpu.pipeline_mode<synchronous>, transform_indices = @transform_4, window_bounds = array<i64: 128, 128>}, {pipeline_mode = #tpu.pipeline_mode<synchronous>, transform_indices = @transform_5, window_bounds = array<i64: 1, 128>}, {pipeline_mode = #tpu.pipeline_mode<synchronous>, transform_indices = @transform_6, window_bounds = array<i64: 128, 128>}, {pipeline_mode = #tpu.pipeline_mode<synchronous>, transform_indices = @transform_7, window_bounds = array<i64: 1, 128>}, {transform_indices = @transform_8, window_bounds = array<i64: 256, 128>}, {transform_indices = @transform_9, window_bounds = array<i64: 256, 128>}]} {
    %c0_i32 = arith.constant 0 : i32
    %0 = arith.cmpi eq, %arg1, %c0_i32 : i32
    %1 = arith.extui %0 : i1 to i32
    %c0_i32_0 = arith.constant 0 : i32
    %2 = arith.cmpi ne, %1, %c0_i32_0 : i32
    scf.if %2 {
      %cst_10 = arith.constant 0.000000e+00 : f32
      %12 = vector.broadcast %cst_10 : f32 to vector<256x128xf32>
      %c0_11 = arith.constant 0 : index
      %c0_12 = arith.constant 0 : index
      %13 = vector.load %arg12[%c0_11, %c0_12] : memref<256x128xf32, #tpu.memory_space<vmem>>, vector<256x128xf32>
      tpu.vector_store %arg12[%c0_11, %c0_12], %12 {strides = array<i32>} : memref<256x128xf32, #tpu.memory_space<vmem>>, vector<256x128xf32>,
    } else {
    }
    %c0 = arith.constant 0 : index
    %c0_1 = arith.constant 0 : index
    %3 = vector.load %arg12[%c0, %c0_1] : memref<256x128xf32, #tpu.memory_space<vmem>>, vector<256x128xf32>
    %c0_2 = arith.constant 0 : index
    %c0_3 = arith.constant 0 : index
    %4 = vector.load %arg2[%c0_2, %c0_3] : memref<256x512xbf16, #tpu.memory_space<vmem>>, vector<256x512xbf16>
    %c0_4 = arith.constant 0 : index
    %c0_5 = arith.constant 0 : index
    %5 = vector.load %arg3[%c0_4, %c0_5] : memref<512x128xbf16, #tpu.memory_space<vmem>>, vector<512x128xbf16>
    %cst = arith.constant dense<0.000000e+00> : vector<256x128xf32>
    %6 = tpu.matmul %4, %5, %cst {dimension_numbers = #tpu.dot_dimension_numbers<[1], [0], [0], [1], [0, 0, 1, 1], [], []>} : vector<256x512xbf16>, vector<512x128xbf16>, vector<256x128xf32> -> vector<256x128xf32>
    %7 = arith.addf %3, %6 : vector<256x128xf32>
    %c0_6 = arith.constant 0 : index
    %c0_7 = arith.constant 0 : index
    %8 = vector.load %arg12[%c0_6, %c0_7] : memref<256x128xf32, #tpu.memory_space<vmem>>, vector<256x128xf32>
    tpu.vector_store %arg12[%c0_6, %c0_7], %7 {strides = array<i32>} : memref<256x128xf32, #tpu.memory_space<vmem>>, vector<256x128xf32>,
    %c0_i32_8 = arith.constant 0 : i32
    %9 = arith.cmpi eq, %arg1, %c0_i32_8 : i32
    %10 = arith.extui %9 : i1 to i32
    %c0_i32_9 = arith.constant 0 : i32
    %11 = arith.cmpi ne, %10, %c0_i32_9 : i32
    scf.if %11 {
      %c0_10 = arith.constant 0 : index
      %c0_11 = arith.constant 0 : index
      %12 = vector.load %arg12[%c0_10, %c0_11] : memref<256x128xf32, #tpu.memory_space<vmem>>, vector<256x128xf32>
      %c0_12 = arith.constant 0 : index
      %c0_13 = arith.constant 0 : index
      %13 = vector.load %arg4[%c0_12, %c0_13] : memref<256x1xf32, #tpu.memory_space<vmem>>, vector<256x1xf32>
      %14 = vector.broadcast %13 : vector<256x1xf32> to vector<256x128xf32>
      %15 = arith.mulf %12, %14 : vector<256x128xf32>
      %c0_14 = arith.constant 0 : index
      %c0_15 = arith.constant 0 : index
      %16 = vector.load %arg5[%c0_14, %c0_15] : memref<1x128xf32, #tpu.memory_space<vmem>>, vector<1x128xf32>
      %17 = vector.broadcast %16 : vector<1x128xf32> to vector<256x128xf32>
      %18 = arith.addf %15, %17 : vector<256x128xf32>
      %cst_16 = arith.constant 0.000000e+00 : f32
      %19 = vector.broadcast %cst_16 : f32 to vector<256x128xf32>
      %20 = arith.maximumf %18, %19 : vector<256x128xf32>
      %c0_17 = arith.constant 0 : index
      %c0_18 = arith.constant 0 : index
      %21 = vector.load %arg10[%c0_17, %c0_18] : memref<256x128xf32, #tpu.memory_space<vmem>>, vector<256x128xf32>
      tpu.vector_store %arg10[%c0_17, %c0_18], %20 {strides = array<i32>} : memref<256x128xf32, #tpu.memory_space<vmem>>, vector<256x128xf32>,
      %22 = arith.truncf %20 : vector<256x128xf32> to vector<256x128xbf16>
      %c0_19 = arith.constant 0 : index
      %c0_20 = arith.constant 0 : index
      %23 = vector.load %arg6[%c0_19, %c0_20] : memref<128x128xbf16, #tpu.memory_space<vmem>>, vector<128x128xbf16>
      %cst_21 = arith.constant dense<0.000000e+00> : vector<256x128xf32>
      %24 = tpu.matmul %22, %23, %cst_21 {dimension_numbers = #tpu.dot_dimension_numbers<[1], [0], [0], [1], [0, 0, 1, 1], [], []>} : vector<256x128xbf16>, vector<128x128xbf16>, vector<256x128xf32> -> vector<256x128xf32>
      %c0_22 = arith.constant 0 : index
      %c0_23 = arith.constant 0 : index
      %25 = vector.load %arg7[%c0_22, %c0_23] : memref<1x128xf32, #tpu.memory_space<vmem>>, vector<1x128xf32>
      %26 = vector.broadcast %25 : vector<1x128xf32> to vector<256x128xf32>
      %27 = arith.addf %24, %26 : vector<256x128xf32>
      %cst_24 = arith.constant 0.000000e+00 : f32
      %28 = vector.broadcast %cst_24 : f32 to vector<256x128xf32>
      %29 = arith.maximumf %27, %28 : vector<256x128xf32>
      %30 = arith.truncf %29 : vector<256x128xf32> to vector<256x128xbf16>
      %c0_25 = arith.constant 0 : index
      %c0_26 = arith.constant 0 : index
      %31 = vector.load %arg8[%c0_25, %c0_26] : memref<128x128xbf16, #tpu.memory_space<vmem>>, vector<128x128xbf16>
      %cst_27 = arith.constant dense<0.000000e+00> : vector<256x128xf32>
      %32 = tpu.matmul %30, %31, %cst_27 {dimension_numbers = #tpu.dot_dimension_numbers<[1], [0], [0], [1], [0, 0, 1, 1], [], []>} : vector<256x128xbf16>, vector<128x128xbf16>, vector<256x128xf32> -> vector<256x128xf32>
      %c0_28 = arith.constant 0 : index
      %c0_29 = arith.constant 0 : index
      %33 = vector.load %arg9[%c0_28, %c0_29] : memref<1x128xf32, #tpu.memory_space<vmem>>, vector<1x128xf32>
      %34 = vector.broadcast %33 : vector<1x128xf32> to vector<256x128xf32>
      %35 = arith.addf %32, %34 : vector<256x128xf32>
      %c0_30 = arith.constant 0 : index
      %c0_31 = arith.constant 0 : index
      %36 = vector.load %arg11[%c0_30, %c0_31] : memref<256x128xf32, #tpu.memory_space<vmem>>, vector<256x128xf32>
      tpu.vector_store %arg11[%c0_30, %c0_31], %35 {strides = array<i32>} : memref<256x128xf32, #tpu.memory_space<vmem>>, vector<256x128xf32>,
    } else {
    }
    return
  }
  func.func @transform_0(%arg0: i32, %arg1: i32) -> (i32, i32) {
    %c0_i32 = arith.constant 0 : i32
    return %arg0, %arg1 : i32, i32
  }
  func.func @transform_1(%arg0: i32, %arg1: i32) -> (i32, i32) {
    %c0_i32 = arith.constant 0 : i32
    %c0_i32_0 = arith.constant 0 : i32
    return %arg1, %c0_i32 : i32, i32
  }
  func.func @transform_2(%arg0: i32, %arg1: i32) -> (i32, i32) {
    %c0_i32 = arith.constant 0 : i32
    %c0_i32_0 = arith.constant 0 : i32
    return %arg0, %c0_i32 : i32, i32
  }
  func.func @transform_3(%arg0: i32, %arg1: i32) -> (i32, i32) {
    %c0_i32 = arith.constant 0 : i32
    %c0_i32_0 = arith.constant 0 : i32
    %c0_i32_1 = arith.constant 0 : i32
    return %c0_i32, %c0_i32_0 : i32, i32
  }
  func.func @transform_4(%arg0: i32, %arg1: i32) -> (i32, i32) {
    %c0_i32 = arith.constant 0 : i32
    %c0_i32_0 = arith.constant 0 : i32
    %c0_i32_1 = arith.constant 0 : i32
    return %c0_i32, %c0_i32_0 : i32, i32
  }
  func.func @transform_5(%arg0: i32, %arg1: i32) -> (i32, i32) {
    %c0_i32 = arith.constant 0 : i32
    %c0_i32_0 = arith.constant 0 : i32
    %c0_i32_1 = arith.constant 0 : i32
    return %c0_i32, %c0_i32_0 : i32, i32
  }
  func.func @transform_6(%arg0: i32, %arg1: i32) -> (i32, i32) {
    %c0_i32 = arith.constant 0 : i32
    %c0_i32_0 = arith.constant 0 : i32
    %c0_i32_1 = arith.constant 0 : i32
    return %c0_i32, %c0_i32_0 : i32, i32
  }
  func.func @transform_7(%arg0: i32, %arg1: i32) -> (i32, i32) {
    %c0_i32 = arith.constant 0 : i32
    %c0_i32_0 = arith.constant 0 : i32
    %c0_i32_1 = arith.constant 0 : i32
    return %c0_i32, %c0_i32_0 : i32, i32
  }
  func.func @transform_8(%arg0: i32, %arg1: i32) -> (i32, i32) {
    %c0_i32 = arith.constant 0 : i32
    %c0_i32_0 = arith.constant 0 : i32
    return %arg0, %c0_i32 : i32, i32
  }
  func.func @transform_9(%arg0: i32, %arg1: i32) -> (i32, i32) {
    %c0_i32 = arith.constant 0 : i32
    %c0_i32_0 = arith.constant 0 : i32
    return %arg0, %c0_i32 : i32, i32
  }
}

</mosaic_0001>

<bundles_post_ra>
// kernel: pretrain_model_forward.2
= control target key start
LH: loop header
LB: loop body
LE: loop exit
PB: predicated region body
PF: predicated region fallthrough
CT: control target
= control target key end

     0   :  { %s1238_s12 = smov 0   ;;  %s1376_s0 = inlined_call_operand.vmem [shape: f32[512,128], index: 0, kind: input, shape index: {}]   ;;  %s1377_s1 = inlined_call_operand.vmem [shape: f32[512,1], index: 1, kind: input, shape index: {}]   ;;  %s1378_s2 = inlined_call_operand.vmem [shape: bf16[128,128], index: 2, kind: input, shape index: {}]   ;;  %s1379_s3 = inlined_call_operand.vmem [shape: bf16[512,128], index: 3, kind: output, shape index: {}]  }
   0x1 LB: > { %s922_s13 = sadd.s32 4294967295, %s1215_s12   ;;  %p926_p0 = scmp.ge.s32.totalorder %s1215_s12, 1  ;;  %s1215_s12 = sphi %s1238_s12, %s13_s12  }
   0x2   : > { %p149_p1 = scmp.lt.s32.totalorder %s1215_s12, 3 }
   0x4   : > { %p150_p2 = pnand %p926_p0, %p149_p1 }
   0x5   : > { %s927_s14 = sshll.u32 (!%p150_p2), %s922_s13, 5 }
   0x6   : > { %153 = sbr.rel (%p150_p2) target bundleno = 406 (0x196), region = 32  ;;  %p179_p3 = scmp.lt.s32.totalorder (!%p150_p2), %s927_s14, 63 }
   0xb   : > { %v1217_v0 = vmov 0   ;;  %v1201_v1 = vld [vmem:[%s1378_s2 + $0x38] sm:$0xff]   ;;  %v1202_v2 = vld [vmem:[%s1378_s2 + $0x30] sm:$0xff]   ;;  %s1381_s14 = smov (!%p179_p3, %s927_s14), 63  ;;  %v1203_v3 = vld [vmem:[%s1378_s2 + $0x28] sm:$0xff]  }
   0xc   : > { %1200 = vset.pattern.permute.xlu1 %v1217_v0  ;;  %1199 = vset.pattern.permute.xlu0 %v1217_v0  ;;  %s928_s19 = sshll.u32 %s1381_s14, 3  ;;  %v1204_v8 = vld [vmem:[%s1378_s2 + $0x20] sm:$0xff]   ;;  %v1205_v11 = vld [vmem:[%s1378_s2 + $0x18] sm:$0xff]   ;;  %v1206_v14 = vld [vmem:[%s1378_s2 + $0x10] sm:$0xff]   ;;  %s932_s11 = sshll.u32 %s1381_s14, 2 }
   0xd   : > { %1126 = vmatprep.subr.bf16.mxu0 %v1201_v1  ;;  %1174 = vmatprep.subr.bf16.mxu1 %v1201_v1  ;;  %s1260_s22 = scalar_lea.vmem %s1377_s1, %s928_s19  ;;  %v1207_v17 = vld [vmem:[%s1378_s2 + $0x8] sm:$0xff]   ;;  %v1208_v20 = vld [vmem:[%s1378_s2] sm:$0xff]   ;;  %s1317_s10 = scalar_lea.vmem %s1376_s0, %s928_s19 }
   0xe   : > { %1127 = vmatpush3.bf16.msra.mxu0 %v1201_v1  ;;  %1182 = vmatpush3.bf16.msra.mxu1 %v1201_v1  ;;  %v245_v4 = vld [vmem:[%s1260_s22 + $0x80] sm:$0xff]  ;;  %v246_v6 = vld [vmem:[%s1260_s22 + $0x88] sm:$0xff]  ;;  %v232_v9 = vld [vmem:[%s1260_s22 + $0x18] sm:$0xff]  ;;  %s1355_s16 = scalar_lea.vmem %s1379_s3, %s932_s11 }
   0xf   : > { %1128 = vmatprep.subr.bf16.mxu0 %v1202_v2  ;;  %1175 = vmatprep.subr.bf16.mxu1 %v1202_v2  ;;  %v229_v5 = vld [vmem:[%s1260_s22] sm:$0xff]  ;;  %v230_v7 = vld [vmem:[%s1260_s22 + $0x8] sm:$0xff]  ;;  %v231_v10 = vld [vmem:[%s1260_s22 + $0x10] sm:$0xff] }
  0x10   : > { %343 = vperm.xlu1 %1200, %v245_v4   ;;  %263 = vperm.xlu0 %1199, %v229_v5   ;;  %v248_v12 = vld [vmem:[%s1260_s22 + $0x98] sm:$0xff]  ;;  %v247_v13 = vld [vmem:[%s1260_s22 + $0x90] sm:$0xff]  ;;  %v234_v15 = vld [vmem:[%s1260_s22 + $0x28] sm:$0xff] }
  0x11   : > { %v233_v16 = vld [vmem:[%s1260_s22 + $0x20] sm:$0xff]  ;;  %v250_v18 = vld [vmem:[%s1260_s22 + $0xa8] sm:$0xff]  ;;  %v236_v21 = vld [vmem:[%s1260_s22 + $0x38] sm:$0xff] }
  0x12   : > { %1129 = vmatpush3.bf16.msra.mxu0 %v1202_v2  ;;  %1183 = vmatpush3.bf16.msra.mxu1 %v1202_v2  ;;  %v249_v19 = vld [vmem:[%s1260_s22 + $0xa0] sm:$0xff]  ;;  %v235_v22 = vld [vmem:[%s1260_s22 + $0x30] sm:$0xff]  ;;  %v252_v23 = vld [vmem:[%s1260_s22 + $0xb8] sm:$0xff] }
  0x13   : > { %1130 = vmatprep.subr.bf16.mxu0 %v1203_v3  ;;  %1176 = vmatprep.subr.bf16.mxu1 %v1203_v3  ;;  %v251_v24 = vld [vmem:[%s1260_s22 + $0xb0] sm:$0xff]  ;;  %v238_v25 = vld [vmem:[%s1260_s22 + $0x48] sm:$0xff]  ;;  %v237_v26 = vld [vmem:[%s1260_s22 + $0x40] sm:$0xff] }
  0x14   : > { %348 = vperm.xlu1 %1200, %v246_v6   ;;  %268 = vperm.xlu0 %1199, %v230_v7   ;;  %v254_v27 = vld [vmem:[%s1260_s22 + $0xc8] sm:$0xff]  ;;  %v253_v28 = vld [vmem:[%s1260_s22 + $0xc0] sm:$0xff]  ;;  %v240_v29 = vld [vmem:[%s1260_s22 + $0x58] sm:$0xff] }
  0x15   : > { %v239_v30 = vld [vmem:[%s1260_s22 + $0x50] sm:$0xff]  ;;  %v256_v31 = vld [vmem:[%s1260_s22 + $0xd8] sm:$0xff]  ;;  %v242_v33 = vld [vmem:[%s1260_s22 + $0x68] sm:$0xff] }
  0x16   : > { %1131 = vmatpush3.bf16.msra.mxu0 %v1203_v3  ;;  %1184 = vmatpush3.bf16.msra.mxu1 %v1203_v3  ;;  %v255_v32 = vld [vmem:[%s1260_s22 + $0xd0] sm:$0xff]  ;;  %v241_v34 = vld [vmem:[%s1260_s22 + $0x60] sm:$0xff]  ;;  %v258_v35 = vld [vmem:[%s1260_s22 + $0xe8] sm:$0xff] }
  0x17   : > { %1132 = vmatprep.subr.bf16.mxu0 %v1204_v8  ;;  %1177 = vmatprep.subr.bf16.mxu1 %v1204_v8  ;;  %v257_v36 = vld [vmem:[%s1260_s22 + $0xe0] sm:$0xff]  ;;  %v244_v37 = vld [vmem:[%s1260_s22 + $0x78] sm:$0xff]  ;;  %v243_v38 = vld [vmem:[%s1260_s22 + $0x70] sm:$0xff] }
  0x18   : > { %278 = vperm.xlu1 %1200, %v232_v9   ;;  %273 = vperm.xlu0 %1199, %v231_v10   ;;  %v260_v39 = vld [vmem:[%s1260_s22 + $0xf8] sm:$0xff]  ;;  %v259_v40 = vld [vmem:[%s1260_s22 + $0xf0] sm:$0xff]  ;;  %v213_v43 = vld [vmem:[%s1317_s10 + $0x80] sm:$0xff] }
  0x19   : > { %v197_v44 = vld [vmem:[%s1317_s10] sm:$0xff]  ;;  %v214_v45 = vld [vmem:[%s1317_s10 + $0x88] sm:$0xff]  ;;  %v200_v53 = vld [vmem:[%s1317_s10 + $0x18] sm:$0xff] }
  0x1a   : > { %1133 = vmatpush3.bf16.msra.mxu0 %v1204_v8  ;;  %1185 = vmatpush3.bf16.msra.mxu1 %v1204_v8  ;;  %v198_v46 = vld [vmem:[%s1317_s10 + $0x8] sm:$0xff]  ;;  %v199_v54 = vld [vmem:[%s1317_s10 + $0x10] sm:$0xff]  ;;  %v216_v61 = vld [vmem:[%s1317_s10 + $0x98] sm:$0xff] }
  0x1b   : > { %1134 = vmatprep.subr.bf16.mxu0 %v1205_v11  ;;  %1178 = vmatprep.subr.bf16.mxu1 %v1205_v11  ;;  %v215_v62 = vld [vmem:[%s1317_s10 + $0x90] sm:$0xff]  ;;  %v202_v4 = vld [vmem:[%s1317_s10 + $0x28] sm:$0xff]  ;;  %v201_v5 = vld [vmem:[%s1317_s10 + $0x20] sm:$0xff] }
  0x1c   : > { %358 = vperm.xlu1 %1200, %v248_v12   ;;  %353 = vperm.xlu0 %1199, %v247_v13   ;;  %v217_v12 = vld [vmem:[%s1317_s10 + $0xa0] sm:$0xff] }
  0x1e   : > { %1135 = vmatpush3.bf16.msra.mxu0 %v1205_v11  ;;  %1186 = vmatpush3.bf16.msra.mxu1 %v1205_v11  ;;  %v218_v11 = vld [vmem:[%s1317_s10 + $0xa8] sm:$0xff] }
  0x1f   : > { %1136 = vmatprep.subr.bf16.mxu0 %v1206_v14  ;;  %1179 = vmatprep.subr.bf16.mxu1 %v1206_v14 }
  0x20   : > { %288 = vperm.xlu1 %1200, %v234_v15   ;;  %283 = vperm.xlu0 %1199, %v233_v16  }
  0x22   : > { %1137 = vmatpush3.bf16.msra.mxu0 %v1206_v14  ;;  %1187 = vmatpush3.bf16.msra.mxu1 %v1206_v14 }
  0x23   : > { %1138 = vmatprep.subr.bf16.mxu0 %v1207_v17  ;;  %1180 = vmatprep.subr.bf16.mxu1 %v1207_v17 }
  0x24   : > { %368 = vperm.xlu1 %1200, %v250_v18   ;;  %363 = vperm.xlu0 %1199, %v249_v19   ;;  %v204_v18 = vld [vmem:[%s1317_s10 + $0x38] sm:$0xff]  ;;  %v203_v19 = vld [vmem:[%s1317_s10 + $0x30] sm:$0xff] }
  0x26   : > { %1139 = vmatpush3.bf16.msra.mxu0 %v1207_v17  ;;  %1188 = vmatpush3.bf16.msra.mxu1 %v1207_v17 }
  0x27   : > { %1140 = vmatprep.subr.bf16.mxu0 %v1208_v20  ;;  %1181 = vmatprep.subr.bf16.mxu1 %v1208_v20 }
  0x28   : > { %298 = vperm.xlu1 %1200, %v236_v21   ;;  %293 = vperm.xlu0 %1199, %v235_v22  }
  0x2a   : > { %1141 = vmatpush3.bf16.msra.mxu0 %v1208_v20  ;;  %1189 = vmatpush3.bf16.msra.mxu1 %v1208_v20 }
  0x2c   : > { %378 = vperm.xlu1 %1200, %v252_v23   ;;  %373 = vperm.xlu0 %1199, %v251_v24  }
  0x30   : > { %308 = vperm.xlu1 %1200, %v238_v25   ;;  %303 = vperm.xlu0 %1199, %v237_v26   ;;  %v220_v25 = vld [vmem:[%s1317_s10 + $0xb8] sm:$0xff]  ;;  %v219_v26 = vld [vmem:[%s1317_s10 + $0xb0] sm:$0xff] }
  0x34   : > { %388 = vperm.xlu1 %1200, %v254_v27   ;;  %383 = vperm.xlu0 %1199, %v253_v28  }
  0x38   : > { %318 = vperm.xlu1 %1200, %v240_v29   ;;  %313 = vperm.xlu0 %1199, %v239_v30  }
  0x3c   : > { %398 = vperm.xlu1 %1200, %v256_v31   ;;  %393 = vperm.xlu0 %1199, %v255_v32   ;;  %v206_v32 = vld [vmem:[%s1317_s10 + $0x48] sm:$0xff] }
  0x40   : > { %328 = vperm.xlu1 %1200, %v242_v33   ;;  %323 = vperm.xlu0 %1199, %v241_v34   ;;  %v205_v33 = vld [vmem:[%s1317_s10 + $0x40] sm:$0xff] }
  0x44   : > { %408 = vperm.xlu1 %1200, %v258_v35   ;;  %403 = vperm.xlu0 %1199, %v257_v36  }
  0x48   : > { %338 = vperm.xlu1 %1200, %v244_v37   ;;  %333 = vperm.xlu0 %1199, %v243_v38  }
  0x4c   : > { %418 = vperm.xlu1 %1200, %v260_v39   ;;  %413 = vperm.xlu0 %1199, %v259_v40   ;;  %v222_v39 = vld [vmem:[%s1317_s10 + $0xc8] sm:$0xff]  ;;  %v221_v40 = vld [vmem:[%s1317_s10 + $0xc0] sm:$0xff] }
  0x8b   : > { %v344_v41 = vpop.permute.xlu1 %343  ;;  %v264_v42 = vpop.permute.xlu0 %263 }
  0x8c   : > { %v437_v49 = vmul.f32 %v344_v41, %v213_v43  ;;  %v421_v50 = vmul.f32 %v264_v42, %v197_v44 }
  0x8f   : > { %v349_v47 = vpop.permute.xlu1 %348  ;;  %v269_v48 = vpop.permute.xlu0 %268 }
  0x90   : > { %v438_v51 = vmul.f32 %v349_v47, %v214_v45  ;;  %v422_v52 = vmul.f32 %v269_v48, %v198_v46  ;;  %v208_v46 = vld [vmem:[%s1317_s10 + $0x58] sm:$0xff]  ;;  %v207_v47 = vld [vmem:[%s1317_s10 + $0x50] sm:$0xff] }
  0x92   : > { %v453_v55 = vpack.c.bf16 %v422_v52, %v421_v50  ;;  %v461_v56 = vpack.c.bf16 %v438_v51, %v437_v49 }
  0x93   : > { %v279_v57 = vpop.permute.xlu1 %278  ;;  %v274_v58 = vpop.permute.xlu0 %273 }
  0x94   : > { %v424_v59 = vmul.f32 %v279_v57, %v200_v53  ;;  %v423_v60 = vmul.f32 %v274_v58, %v199_v54  ;;  %1142 = vmatprep.mubr.bf16.mxu0 %v453_v55  ;;  %1158 = vmatprep.mubr.bf16.mxu1 %v461_v56  ;;  %v224_v53 = vld [vmem:[%s1317_s10 + $0xd8] sm:$0xff]  ;;  %v223_v54 = vld [vmem:[%s1317_s10 + $0xd0] sm:$0xff] }
  0x96   : > { %v454_v63 = vpack.c.bf16 %v424_v59, %v423_v60  ;;  %v210_v60 = vld [vmem:[%s1317_s10 + $0x68] sm:$0xff] }
  0x97   : > { %v359_v0 = vpop.permute.xlu1 %358  ;;  %v354_v1 = vpop.permute.xlu0 %353 }
  0x98   : > { %v440_v2 = vmul.f32 %v359_v0, %v216_v61  ;;  %v439_v3 = vmul.f32 %v354_v1, %v215_v62  ;;  %1143 = vmatmul.mubr.bf16.vlgmr.msra.gmra.mxu0 %v454_v63  ;;  %v209_v61 = vld [vmem:[%s1317_s10 + $0x60] sm:$0xff] }
  0x9a   : > { %v462_v6 = vpack.c.bf16 %v440_v2, %v439_v3  ;;  %v226_v3 = vld [vmem:[%s1317_s10 + $0xe8] sm:$0xff] }
  0x9b   : > { %v289_v7 = vpop.permute.xlu1 %288  ;;  %v284_v8 = vpop.permute.xlu0 %283 }
  0x9c   : > { %v426_v9 = vmul.f32 %v289_v7, %v202_v4  ;;  %v425_v10 = vmul.f32 %v284_v8, %v201_v5  ;;  %1159 = vmatmul.mubr.bf16.vlgmr.msra.gmra.mxu1 %v462_v6  ;;  %v225_v4 = vld [vmem:[%s1317_s10 + $0xe0] sm:$0xff] }
  0x9e   : > { %v455_v13 = vpack.c.bf16 %v426_v9, %v425_v10  ;;  %v212_v10 = vld [vmem:[%s1317_s10 + $0x78] sm:$0xff] }
  0x9f   : > { %v369_v14 = vpop.permute.xlu1 %368  ;;  %v364_v15 = vpop.permute.xlu0 %363 }
  0xa0   : > { %v442_v16 = vmul.f32 %v369_v14, %v218_v11  ;;  %v441_v17 = vmul.f32 %v364_v15, %v217_v12  ;;  %1146 = vmatprep.mubr.bf16.mxu0 %v455_v13  ;;  %v211_v11 = vld [vmem:[%s1317_s10 + $0x70] sm:$0xff] }
  0xa2   : > { %v463_v20 = vpack.c.bf16 %v442_v16, %v441_v17  ;;  %v228_v17 = vld [vmem:[%s1317_s10 + $0xf8] sm:$0xff] }
  0xa3   : > { %v299_v21 = vpop.permute.xlu1 %298  ;;  %v294_v22 = vpop.permute.xlu0 %293 }
  0xa4   : > { %v428_v23 = vmul.f32 %v299_v21, %v204_v18  ;;  %v427_v24 = vmul.f32 %v294_v22, %v203_v19  ;;  %1162 = vmatprep.mubr.bf16.mxu1 %v463_v20  ;;  %v227_v18 = vld [vmem:[%s1317_s10 + $0xf0] sm:$0xff] }
  0xa6   : > { %v456_v27 = vpack.c.bf16 %v428_v23, %v427_v24 }
  0xa7   : > { %v379_v28 = vpop.permute.xlu1 %378  ;;  %v374_v29 = vpop.permute.xlu0 %373 }
  0xa8   : > { %v444_v30 = vmul.f32 %v379_v28, %v220_v25  ;;  %v443_v31 = vmul.f32 %v374_v29, %v219_v26  ;;  %1147 = vmatmul.mubr.bf16.gmra.mxu0 %v456_v27 }
  0xaa   : > { %v464_v34 = vpack.c.bf16 %v444_v30, %v443_v31 }
  0xab   : > { %v309_v35 = vpop.permute.xlu1 %308  ;;  %v304_v36 = vpop.permute.xlu0 %303 }
  0xac   : > { %v430_v37 = vmul.f32 %v309_v35, %v206_v32  ;;  %v429_v38 = vmul.f32 %v304_v36, %v205_v33  ;;  %1163 = vmatmul.mubr.bf16.gmra.mxu1 %v464_v34 }
  0xae   : > { %v457_v41 = vpack.c.bf16 %v430_v37, %v429_v38 }
  0xaf   : > { %v389_v42 = vpop.permute.xlu1 %388  ;;  %v384_v43 = vpop.permute.xlu0 %383 }
  0xb0   : > { %v446_v44 = vmul.f32 %v389_v42, %v222_v39  ;;  %v445_v45 = vmul.f32 %v384_v43, %v221_v40  ;;  %1150 = vmatprep.mubr.bf16.mxu0 %v457_v41 }
  0xb2   : > { %v465_v48 = vpack.c.bf16 %v446_v44, %v445_v45 }
  0xb3   : > { %v319_v49 = vpop.permute.xlu1 %318  ;;  %v314_v50 = vpop.permute.xlu0 %313 }
  0xb4   : > { %v432_v51 = vmul.f32 %v319_v49, %v208_v46  ;;  %v431_v52 = vmul.f32 %v314_v50, %v207_v47  ;;  %1166 = vmatprep.mubr.bf16.mxu1 %v465_v48 }
  0xb6   : > { %v458_v55 = vpack.c.bf16 %v432_v51, %v431_v52 }
  0xb7   : > { %v399_v56 = vpop.permute.xlu1 %398  ;;  %v394_v57 = vpop.permute.xlu0 %393 }
  0xb8   : > { %v448_v58 = vmul.f32 %v399_v56, %v224_v53  ;;  %v447_v59 = vmul.f32 %v394_v57, %v223_v54  ;;  %1151 = vmatmul.mubr.bf16.gmra.mxu0 %v458_v55 }
  0xba   : > { %v466_v62 = vpack.c.bf16 %v448_v58, %v447_v59 }
  0xbb   : > { %v329_v63 = vpop.permute.xlu1 %328  ;;  %v324_v0 = vpop.permute.xlu0 %323 }
  0xbc   : > { %v434_v1 = vmul.f32 %v329_v63, %v210_v60  ;;  %v433_v2 = vmul.f32 %v324_v0, %v209_v61  ;;  %1167 = vmatmul.mubr.bf16.gmra.mxu1 %v466_v62 }
  0xbe   : > { %v459_v5 = vpack.c.bf16 %v434_v1, %v433_v2 }
  0xbf   : > { %v409_v6 = vpop.permute.xlu1 %408  ;;  %v404_v7 = vpop.permute.xlu0 %403 }
  0xc0   : > { %v450_v8 = vmul.f32 %v409_v6, %v226_v3  ;;  %v449_v9 = vmul.f32 %v404_v7, %v225_v4  ;;  %1154 = vmatprep.mubr.bf16.mxu0 %v459_v5 }
  0xc2   : > { %v467_v12 = vpack.c.bf16 %v450_v8, %v449_v9 }
  0xc3   : > { %v339_v13 = vpop.permute.xlu1 %338  ;;  %v334_v14 = vpop.permute.xlu0 %333 }
  0xc4   : > { %v436_v15 = vmul.f32 %v339_v13, %v212_v10  ;;  %v435_v16 = vmul.f32 %v334_v14, %v211_v11  ;;  %1170 = vmatprep.mubr.bf16.mxu1 %v467_v12 }
  0xc6   : > { %v460_v19 = vpack.c.bf16 %v436_v15, %v435_v16 }
  0xc7   : > { %v419_v20 = vpop.permute.xlu1 %418  ;;  %v414_v21 = vpop.permute.xlu0 %413 }
  0xc8   : > { %v452_v22 = vmul.f32 %v419_v20, %v228_v17  ;;  %v451_v23 = vmul.f32 %v414_v21, %v227_v18  ;;  %1155 = vmatmul.mubr.bf16.gmra.mxu0 %v460_v19 }
  0xca   : > { %v468_v24 = vpack.c.bf16 %v452_v22, %v451_v23 }
  0xcc   : > { %1171 = vmatmul.mubr.bf16.gmra.mxu1 %v468_v24 }
 0x158   : > { %v1144_v25 = vpop.f32.mrf.mxu0 }
 0x15a   : > { %v567_v26 = vpop.f32.mrf.mxu0 }
 0x15c   : > { %v1145_v27 = vpop.f32.mrf.mxu0  ;;  %v1160_v28 = vpop.f32.mrf.mxu1 }
 0x15d   : > { %v1015_v29 = vpack.c.bf16 %v1145_v27, %v1144_v25 }
 0x15e   : > { %v570_v30 = vpop.f32.mrf.mxu0  ;;  %v631_v31 = vpop.f32.mrf.mxu1 }
 0x15f   : > { %1087 = vst [vmem:[%s1355_s16 + $0x8] sm:$0xff] %v1015_v29   ;;  %v1010_v32 = vpack.c.bf16 %v570_v30, %v567_v26 }
 0x160   : > { %v1161_v33 = vpop.f32.mrf.mxu1 }
 0x161   : > { %1011 = vst [vmem:[%s1355_s16] sm:$0xff] %v1010_v32   ;;  %v1055_v34 = vpack.c.bf16 %v1161_v33, %v1160_v28 }
 0x162   : > { %v634_v35 = vpop.f32.mrf.mxu1 }
 0x163   : > { %1095 = vst [vmem:[%s1355_s16 + $0x48] sm:$0xff] %v1055_v34   ;;  %v1050_v36 = vpack.c.bf16 %v634_v35, %v631_v31 }
 0x165   : > { %1094 = vst [vmem:[%s1355_s16 + $0x40] sm:$0xff] %v1050_v36  }
 0x168   : > { %v1148_v37 = vpop.f32.mrf.mxu0 }
 0x16a   : > { %v583_v38 = vpop.f32.mrf.mxu0 }
 0x16c   : > { %v1149_v39 = vpop.f32.mrf.mxu0  ;;  %v1164_v40 = vpop.f32.mrf.mxu1 }
 0x16d   : > { %v1025_v41 = vpack.c.bf16 %v1149_v39, %v1148_v37 }
 0x16e   : > { %v586_v42 = vpop.f32.mrf.mxu0  ;;  %v647_v43 = vpop.f32.mrf.mxu1 }
 0x16f   : > { %1089 = vst [vmem:[%s1355_s16 + $0x18] sm:$0xff] %v1025_v41   ;;  %v1020_v44 = vpack.c.bf16 %v586_v42, %v583_v38 }
 0x170   : > { %v1165_v45 = vpop.f32.mrf.mxu1 }
 0x171   : > { %1088 = vst [vmem:[%s1355_s16 + $0x10] sm:$0xff] %v1020_v44   ;;  %v1065_v46 = vpack.c.bf16 %v1165_v45, %v1164_v40 }
 0x172   : > { %v650_v47 = vpop.f32.mrf.mxu1 }
 0x173   : > { %1097 = vst [vmem:[%s1355_s16 + $0x58] sm:$0xff] %v1065_v46   ;;  %v1060_v48 = vpack.c.bf16 %v650_v47, %v647_v43 }
 0x175   : > { %1096 = vst [vmem:[%s1355_s16 + $0x50] sm:$0xff] %v1060_v48  }
 0x178   : > { %v1152_v49 = vpop.f32.mrf.mxu0 }
 0x17a   : > { %v599_v50 = vpop.f32.mrf.mxu0 }
 0x17c   : > { %v1153_v51 = vpop.f32.mrf.mxu0  ;;  %v1168_v52 = vpop.f32.mrf.mxu1 }
 0x17d   : > { %v1035_v53 = vpack.c.bf16 %v1153_v51, %v1152_v49 }
 0x17e   : > { %v602_v54 = vpop.f32.mrf.mxu0  ;;  %v663_v55 = vpop.f32.mrf.mxu1 }
 0x17f   : > { %1091 = vst [vmem:[%s1355_s16 + $0x28] sm:$0xff] %v1035_v53   ;;  %v1030_v56 = vpack.c.bf16 %v602_v54, %v599_v50 }
 0x180   : > { %v1169_v57 = vpop.f32.mrf.mxu1 }
 0x181   : > { %1090 = vst [vmem:[%s1355_s16 + $0x20] sm:$0xff] %v1030_v56   ;;  %v1075_v58 = vpack.c.bf16 %v1169_v57, %v1168_v52 }
 0x182   : > { %v666_v59 = vpop.f32.mrf.mxu1 }
 0x183   : > { %1099 = vst [vmem:[%s1355_s16 + $0x68] sm:$0xff] %v1075_v58   ;;  %v1070_v60 = vpack.c.bf16 %v666_v59, %v663_v55 }
 0x185   : > { %1098 = vst [vmem:[%s1355_s16 + $0x60] sm:$0xff] %v1070_v60  }
 0x188   : > { %v1156_v61 = vpop.f32.mrf.mxu0 }
 0x18a   : > { %v615_v62 = vpop.f32.mrf.mxu0 }
 0x18c   : > { %v1157_v63 = vpop.f32.mrf.mxu0  ;;  %v1172_v0 = vpop.f32.mrf.mxu1 }
 0x18d   : > { %v1045_v1 = vpack.c.bf16 %v1157_v63, %v1156_v61 }
 0x18e   : > { %v618_v2 = vpop.f32.mrf.mxu0  ;;  %v679_v3 = vpop.f32.mrf.mxu1 }
 0x18f   : > { %1093 = vst [vmem:[%s1355_s16 + $0x38] sm:$0xff] %v1045_v1   ;;  %v1040_v4 = vpack.c.bf16 %v618_v2, %v615_v62 }
 0x190   : > { %v1173_v5 = vpop.f32.mrf.mxu1 }
 0x191   : > { %1092 = vst [vmem:[%s1355_s16 + $0x30] sm:$0xff] %v1040_v4   ;;  %v1085_v6 = vpack.c.bf16 %v1173_v5, %v1172_v0 }
 0x192   : > { %v682_v7 = vpop.f32.mrf.mxu1 }
 0x193   : > { %1101 = vst [vmem:[%s1355_s16 + $0x78] sm:$0xff] %v1085_v6   ;;  %v1080_v8 = vpack.c.bf16 %v682_v7, %v679_v3 }
 0x195   : > { %1100 = vst [vmem:[%s1355_s16 + $0x70] sm:$0xff] %v1080_v8  }
 0x196 PF: > { %s13_s12 = sadd.s32 1, %s1215_s12  }
 0x197   : > { %p10_p4 = scmp.ge.s32.totalorder %s13_s12, 4  }
 0x199   :  { %12 = sbr.rel (!%p10_p4) target bundleno = 1 (0x1), region = 65 }

// kernel: pretrain_model_forward.3
= control target key start
LH: loop header
LB: loop body
LE: loop exit
PB: predicated region body
PF: predicated region fallthrough
CT: control target
= control target key end

     0   :  { %s3321_s30 = smov 0   ;;  %s3323_s10 = smov 0   ;;  %s3795_s0 = inlined_call_operand.vmem [shape: bf16[512,512], index: 0, kind: input, shape index: {}]   ;;  %s3796_s1 = inlined_call_operand.vmem [shape: bf16[512,128], index: 1, kind: input, shape index: {}]   ;;  %s3797_s2 = inlined_call_operand.vmem [shape: f32[512,1], index: 2, kind: input, shape index: {}]   ;;  %s3798_s3 = inlined_call_operand.vmem [shape: f32[1,128], index: 3, kind: input, shape index: {}]   ;;  %s3799_s4 = inlined_call_operand.vmem [shape: bf16[128,128], index: 4, kind: input, shape index: {}]   ;;  %s3800_s5 = inlined_call_operand.vmem [shape: f32[1,128], index: 5, kind: input, shape index: {}]   ;;  %s3801_s6 = inlined_call_operand.vmem [shape: bf16[128,128], index: 6, kind: input, shape index: {}]   ;;  %s3802_s7 = inlined_call_operand.vmem [shape: f32[1,128], index: 7, kind: input, shape index: {}]   ;;  %s3803_s8 = inlined_call_operand.vmem [shape: f32[512,128], index: 8, kind: output, shape index: {0}]   ;;  %s3804_s9 = inlined_call_operand.vmem [shape: f32[512,128], index: 9, kind: output, shape index: {1}]  }
   0x1   :  { %s3325_s11 = smov 0  }
   0x2 LB: > { %s32_s12 = sadd.s32 1, %s3264_s10  ;;  %p2579_p0 = scmp.ge.s32.totalorder %s3268_s11, 1  ;;  %s3268_s11 = sphi %s3325_s11, %s20_s11   ;;  %s3264_s10 = sphi %s3323_s10, %s3806_s10   ;;  %s3260_s30 = sphi %s3321_s30, %s3805_s30  }
   0x3   : > { %p34_p1 = scmp.ge.s32.totalorder %s32_s12, 2  ;;  %p333_p2 = scmp.lt.s32.totalorder %s3268_s11, 3 }
   0x5   : > { %s3808_s12 = smov (%p34_p1, %s32_s12), 0  ;;  %p334_p3 = pnand %p2579_p0, %p333_p2 }
   0x6   : > { %s2580_s28 = sshll.u32 (!%p334_p3), %s3260_s30, 5 }
   0x7   : > { %337 = sbr.rel (%p334_p3) target bundleno = 786 (0x312), region = 52  ;;  %p391_p4 = scmp.lt.s32.totalorder (!%p334_p3), %s2580_s28, 63 }
   0xc   : > { %v3102_v0 = vld [vmem:[%s3796_s1 + $0x78] sm:$0xff]   ;;  %v3270_v4 = vmov 0   ;;  %v3106_v5 = vld [vmem:[%s3796_s1 + $0x70] sm:$0xff]   ;;  %v3110_v9 = vld [vmem:[%s3796_s1 + $0x68] sm:$0xff]   ;;  %s3810_s28 = smov (!%p391_p4, %s2580_s28), 63 }
   0xd   : > { %v3103_v1 = vld [vmem:[%s3796_s1 + $0xf8] sm:$0xff]   ;;  %2707 = vmatprep.subr.bf16.mxu0 %v3102_v0  ;;  %3100 = vset.pattern.permute.xlu0 %v3270_v4  ;;  %v3107_v6 = vld [vmem:[%s3796_s1 + $0xf0] sm:$0xff]   ;;  %v3111_v10 = vld [vmem:[%s3796_s1 + $0xe8] sm:$0xff]   ;;  %s2706_s17 = sshll.u32 %s3810_s28, 4  ;;  %s3461_s14 = sshll.u32 %s3810_s28, 3 }
   0xe   : > { %v3104_v2 = vld [vmem:[%s3796_s1 + $0x38] sm:$0xff]   ;;  %2819 = vmatprep.subr.bf16.mxu1 %v3103_v1  ;;  %3101 = vset.pattern.permute.xlu1 %v3270_v4  ;;  %v3108_v7 = vld [vmem:[%s3796_s1 + $0x30] sm:$0xff]   ;;  %v3112_v11 = vld [vmem:[%s3796_s1 + $0x28] sm:$0xff]   ;;  %s3438_s25 = scalar_lea.vmem %s3795_s0, %s2706_s17  ;;  %s3468_s17 = scalar_lea.vmem %s3797_s2, %s3461_s14 }
   0xf   : > { %v3105_v3 = vld [vmem:[%s3796_s1 + $0xb8] sm:$0xff]   ;;  %2708 = vmatpush3.bf16.msra.mxu0 %v3104_v2  ;;  %v3109_v8 = vld [vmem:[%s3796_s1 + $0xb0] sm:$0xff]   ;;  %v3113_v12 = vld [vmem:[%s3796_s1 + $0xa8] sm:$0xff]   ;;  %s3585_s30 = scalar_lea.vmem %s3803_s8, %s3461_s14  ;;  %s3720_s26 = scalar_lea.vmem %s3804_s9, %s3461_s14 }
  0x10   : > { %2820 = vmatpush3.bf16.msra.mxu1 %v3105_v3  ;;  %2709 = vmatprep.subr.bf16.mxu0 %v3106_v5  ;;  %v3114_v13 = vld [vmem:[%s3796_s1 + $0x60] sm:$0xff]   ;;  %v3118_v17 = vld [vmem:[%s3796_s1 + $0x58] sm:$0xff]   ;;  %v3122_v21 = vld [vmem:[%s3796_s1 + $0x50] sm:$0xff]  }
  0x11   : > { %2821 = vmatprep.subr.bf16.mxu1 %v3107_v6  ;;  %v3115_v14 = vld [vmem:[%s3796_s1 + $0xe0] sm:$0xff]   ;;  %v3119_v18 = vld [vmem:[%s3796_s1 + $0xd8] sm:$0xff]   ;;  %v3123_v22 = vld [vmem:[%s3796_s1 + $0xd0] sm:$0xff]  }
  0x12   : > { %v3116_v15 = vld [vmem:[%s3796_s1 + $0x20] sm:$0xff]   ;;  %v3120_v19 = vld [vmem:[%s3796_s1 + $0x18] sm:$0xff]   ;;  %v3124_v23 = vld [vmem:[%s3796_s1 + $0x10] sm:$0xff]  }
  0x13   : > { %2710 = vmatpush3.bf16.msra.mxu0 %v3108_v7  ;;  %v3117_v16 = vld [vmem:[%s3796_s1 + $0xa0] sm:$0xff]   ;;  %v3121_v20 = vld [vmem:[%s3796_s1 + $0x98] sm:$0xff]   ;;  %v3125_v24 = vld [vmem:[%s3796_s1 + $0x90] sm:$0xff]  }
  0x14   : > { %2822 = vmatpush3.bf16.msra.mxu1 %v3109_v8  ;;  %2711 = vmatprep.subr.bf16.mxu0 %v3110_v9  ;;  %v3126_v25 = vld [vmem:[%s3796_s1 + $0x48] sm:$0xff]   ;;  %v3130_v29 = vld [vmem:[%s3796_s1 + $0x40] sm:$0xff]   ;;  %v1557_v52 = vld [vmem:[%s3468_s17 + $0x10] sm:$0xff] }
  0x15   : > { %2823 = vmatprep.subr.bf16.mxu1 %v3111_v10  ;;  %v3127_v26 = vld [vmem:[%s3796_s1 + $0xc8] sm:$0xff]   ;;  %v3131_v30 = vld [vmem:[%s3796_s1 + $0xc0] sm:$0xff]   ;;  %1599 = vperm.xlu1 %3101, %v1557_v52   ;;  %v1558_v54 = vld [vmem:[%s3468_s17 + $0x18] sm:$0xff] }
  0x16   : > { %v3128_v27 = vld [vmem:[%s3796_s1 + $0x8] sm:$0xff]   ;;  %v3132_v31 = vld [vmem:[%s3796_s1] sm:$0xff]   ;;  %v1561_v61 = vld [vmem:[%s3468_s17 + $0x30] sm:$0xff] }
  0x17   : > { %2712 = vmatpush3.bf16.msra.mxu0 %v3112_v11  ;;  %v3129_v28 = vld [vmem:[%s3796_s1 + $0x88] sm:$0xff]   ;;  %v3133_v32 = vld [vmem:[%s3796_s1 + $0x80] sm:$0xff]   ;;  %v1562_v62 = vld [vmem:[%s3468_s17 + $0x38] sm:$0xff] }
  0x18   : > { %2824 = vmatpush3.bf16.msra.mxu1 %v3113_v12  ;;  %2713 = vmatprep.subr.bf16.mxu0 %v3114_v13  ;;  %v3134_v33 = vld [vmem:[%s3438_s25] ss:$16 sps:$4 sm:$0xff]   ;;  %v3136_v34 = vld [vmem:[%s3438_s25 + $0x4] ss:$16 sps:$4 sm:$0xff]   ;;  %v3137_v35 = vld [vmem:[%s3438_s25 + $0x8] ss:$16 sps:$4 sm:$0xff]  }
  0x19   : > { %2825 = vmatprep.subr.bf16.mxu1 %v3115_v14  ;;  %v3139_v36 = vld [vmem:[%s3438_s25 + $0xc] ss:$16 sps:$4 sm:$0xff]   ;;  %1166 = vmatprep.mubr.bf16.mxu0 %v3136_v34  ;;  %v3140_v37 = vld [vmem:[%s3438_s25 + $0x24] ss:$16 sps:$4 sm:$0xff]   ;;  %v3144_v39 = vld [vmem:[%s3438_s25 + $0x20] ss:$16 sps:$4 sm:$0xff]  }
  0x1a   : > { %1327 = vmatprep.mubr.bf16.mxu1 %v3139_v36  ;;  %v3142_v38 = vld [vmem:[%s3438_s25 + $0x2c] ss:$16 sps:$4 sm:$0xff]   ;;  %v3145_v40 = vld [vmem:[%s3438_s25 + $0x28] ss:$16 sps:$4 sm:$0xff]   ;;  %v3146_v41 = vld [vmem:[%s3438_s25 + $0x44] ss:$16 sps:$4 sm:$0xff]   ;;  %1604 = vperm.xlu1 %3101, %v1558_v54  }
  0x1b   : > { %2714 = vmatpush3.bf16.msra.mxu0 %v3116_v15  ;;  %v3148_v42 = vld [vmem:[%s3438_s25 + $0x4c] ss:$16 sps:$4 sm:$0xff]   ;;  %v3150_v43 = vld [vmem:[%s3438_s25 + $0x40] ss:$16 sps:$4 sm:$0xff]   ;;  %v3151_v44 = vld [vmem:[%s3438_s25 + $0x48] ss:$16 sps:$4 sm:$0xff]  }
  0x1c   : > { %2826 = vmatpush3.bf16.msra.mxu1 %v3117_v16  ;;  %2715 = vmatprep.subr.bf16.mxu0 %v3118_v17  ;;  %v3152_v45 = vld [vmem:[%s3438_s25 + $0x64] ss:$16 sps:$4 sm:$0xff]   ;;  %v3154_v46 = vld [vmem:[%s3438_s25 + $0x6c] ss:$16 sps:$4 sm:$0xff]   ;;  %v3156_v47 = vld [vmem:[%s3438_s25 + $0x60] ss:$16 sps:$4 sm:$0xff]  }
  0x1d   : > { %2827 = vmatprep.subr.bf16.mxu1 %v3119_v18  ;;  %v3157_v48 = vld [vmem:[%s3438_s25 + $0x68] ss:$16 sps:$4 sm:$0xff]   ;;  %v3158_v49 = vld [vmem:[%s3438_s25 + $0x84] ss:$16 sps:$4 sm:$0xff]   ;;  %v3160_v50 = vld [vmem:[%s3438_s25 + $0x8c] ss:$16 sps:$4 sm:$0xff]  }
  0x1e   : > { %v1555_v51 = vld [vmem:[%s3468_s17] sm:$0xff]  ;;  %v1556_v53 = vld [vmem:[%s3468_s17 + $0x8] sm:$0xff]  ;;  %v1565_v5 = vld [vmem:[%s3468_s17 + $0x50] sm:$0xff] }
  0x1f   : > { %2716 = vmatpush3.bf16.msra.mxu0 %v3120_v19  ;;  %1589 = vperm.xlu0 %3100, %v1555_v51   ;;  %v3162_v55 = vld [vmem:[%s3438_s25 + $0x80] ss:$16 sps:$4 sm:$0xff]   ;;  %v3163_v57 = vld [vmem:[%s3438_s25 + $0x88] ss:$16 sps:$4 sm:$0xff]   ;;  %v3164_v58 = vld [vmem:[%s3438_s25 + $0xa4] ss:$16 sps:$4 sm:$0xff]  }
  0x20   : > { %2828 = vmatpush3.bf16.msra.mxu1 %v3121_v20  ;;  %2717 = vmatprep.subr.bf16.mxu0 %v3122_v21  ;;  %v1559_v56 = vld [vmem:[%s3468_s17 + $0x20] sm:$0xff]  ;;  %v1560_v59 = vld [vmem:[%s3468_s17 + $0x28] sm:$0xff]  ;;  %v1566_v6 = vld [vmem:[%s3468_s17 + $0x58] sm:$0xff] }
  0x21   : > { %2829 = vmatprep.subr.bf16.mxu1 %v3123_v22  ;;  %v3166_v60 = vld [vmem:[%s3438_s25 + $0xac] ss:$16 sps:$4 sm:$0xff]   ;;  %1614 = vperm.xlu1 %3101, %v1560_v59   ;;  %v3168_v63 = vld [vmem:[%s3438_s25 + $0xa0] ss:$16 sps:$4 sm:$0xff]   ;;  %v3169_v1 = vld [vmem:[%s3438_s25 + $0xa8] ss:$16 sps:$4 sm:$0xff]  }
  0x22   : > { %v1563_v0 = vld [vmem:[%s3468_s17 + $0x40] sm:$0xff]  ;;  %v1564_v3 = vld [vmem:[%s3468_s17 + $0x48] sm:$0xff]  ;;  %v1569_v13 = vld [vmem:[%s3468_s17 + $0x70] sm:$0xff] }
  0x23   : > { %2718 = vmatpush3.bf16.msra.mxu0 %v3124_v23  ;;  %1594 = vperm.xlu0 %3100, %v1556_v53   ;;  %v3170_v2 = vld [vmem:[%s3438_s25 + $0xc4] ss:$16 sps:$4 sm:$0xff]   ;;  %v3172_v4 = vld [vmem:[%s3438_s25 + $0xcc] ss:$16 sps:$4 sm:$0xff]   ;;  %v3174_v7 = vld [vmem:[%s3438_s25 + $0xc0] ss:$16 sps:$4 sm:$0xff]  }
  0x24   : > { %2830 = vmatpush3.bf16.msra.mxu1 %v3125_v24  ;;  %2719 = vmatprep.subr.bf16.mxu0 %v3126_v25  ;;  %v1567_v8 = vld [vmem:[%s3468_s17 + $0x60] sm:$0xff]  ;;  %v3175_v9 = vld [vmem:[%s3438_s25 + $0xc8] ss:$16 sps:$4 sm:$0xff]   ;;  %v3178_v12 = vld [vmem:[%s3438_s25 + $0xec] ss:$16 sps:$4 sm:$0xff]  }
  0x25   : > { %2831 = vmatprep.subr.bf16.mxu1 %v3127_v26  ;;  %1624 = vperm.xlu1 %3101, %v1562_v62   ;;  %v3176_v10 = vld [vmem:[%s3438_s25 + $0xe4] ss:$16 sps:$4 sm:$0xff]   ;;  %v1568_v11 = vld [vmem:[%s3468_s17 + $0x68] sm:$0xff]  ;;  %v1570_v14 = vld [vmem:[%s3468_s17 + $0x78] sm:$0xff] }
  0x26   : > { %v3180_v15 = vld [vmem:[%s3438_s25 + $0xe0] ss:$16 sps:$4 sm:$0xff]   ;;  %v3230_v17 = vld [vmem:[%s3799_s4 + $0x38] sm:$0xff]   ;;  %v3182_v19 = vld [vmem:[%s3438_s25 + $0x104] ss:$16 sps:$4 sm:$0xff]  }
  0x27   : > { %2720 = vmatpush3.bf16.msra.mxu0 %v3128_v27  ;;  %1609 = vperm.xlu0 %3100, %v1559_v56   ;;  %v1571_v16 = vld [vmem:[%s3468_s17 + $0x80] sm:$0xff]  ;;  %v3181_v18 = vld [vmem:[%s3438_s25 + $0xe8] ss:$16 sps:$4 sm:$0xff]   ;;  %v3231_v20 = vld [vmem:[%s3799_s4 + $0x30] sm:$0xff]  }
  0x28   : > { %2832 = vmatpush3.bf16.msra.mxu1 %v3129_v28  ;;  %2721 = vmatprep.subr.bf16.mxu0 %v3130_v29  ;;  %v3184_v21 = vld [vmem:[%s3438_s25 + $0x10c] ss:$16 sps:$4 sm:$0xff]   ;;  %v1573_v24 = vld [vmem:[%s3468_s17 + $0x90] sm:$0xff]  ;;  %v1575_v27 = vld [vmem:[%s3468_s17 + $0xa0] sm:$0xff] }
  0x29   : > { %2833 = vmatprep.subr.bf16.mxu1 %v3131_v30  ;;  %1634 = vperm.xlu1 %3101, %v1564_v3   ;;  %v1572_v22 = vld [vmem:[%s3468_s17 + $0x88] sm:$0xff]  ;;  %v1574_v25 = vld [vmem:[%s3468_s17 + $0x98] sm:$0xff]  ;;  %v3186_v26 = vld [vmem:[%s3438_s25 + $0x100] ss:$16 sps:$4 sm:$0xff]  }
  0x2a   : > { %v3232_v23 = vld [vmem:[%s3799_s4 + $0x28] sm:$0xff]   ;;  %v3188_v29 = vld [vmem:[%s3438_s25 + $0x124] ss:$16 sps:$4 sm:$0xff]   ;;  %v3192_v34 = vld [vmem:[%s3438_s25 + $0x120] ss:$16 sps:$4 sm:$0xff]  }
  0x2b   : > { %2722 = vmatpush3.bf16.msra.mxu0 %v3132_v31  ;;  %1619 = vperm.xlu0 %3100, %v1561_v61   ;;  %v3187_v28 = vld [vmem:[%s3438_s25 + $0x108] ss:$16 sps:$4 sm:$0xff]   ;;  %v3190_v31 = vld [vmem:[%s3438_s25 + $0x12c] ss:$16 sps:$4 sm:$0xff]   ;;  %v3233_v36 = vld [vmem:[%s3799_s4 + $0x20] sm:$0xff]  }
  0x2c   : > { %2834 = vmatpush3.bf16.msra.mxu1 %v3133_v32  ;;  %2979 = vmatprep.subr.bf16.mxu0 %v3230_v17  ;;  %v1576_v30 = vld [vmem:[%s3468_s17 + $0xa8] sm:$0xff]  ;;  %v1577_v32 = vld [vmem:[%s3468_s17 + $0xb0] sm:$0xff]  ;;  %v1586_v52 = vld [vmem:[%s3468_s17 + $0xf8] sm:$0xff] }
  0x2d   : > { %1644 = vperm.xlu1 %3101, %v1566_v6   ;;  %v1585_v51 = vld [vmem:[%s3468_s17 + $0xf0] sm:$0xff]  ;;  %v3236_v53 = vld [vmem:[%s3799_s4 + $0x8] sm:$0xff]  }
  0x2e   : > { %1167 = vmatmul.mubr.bf16.vlgmr.msra.gmra.mxu0 %v3134_v33  ;;  %v1578_v33 = vld [vmem:[%s3468_s17 + $0xb8] sm:$0xff]  ;;  %v3204_v54 = vld [vmem:[%s3438_s25 + $0x160] ss:$16 sps:$4 sm:$0xff]   ;;  %v3206_v56 = vld [vmem:[%s3438_s25 + $0x184] ss:$16 sps:$4 sm:$0xff]  }
  0x2f   : > { %1328 = vmatmul.mubr.bf16.vlgmr.msra.gmra.mxu1 %v3137_v35  ;;  %1174 = vmatprep.mubr.bf16.mxu0 %v3140_v37  ;;  %v1579_v35 = vld [vmem:[%s3468_s17 + $0xc0] sm:$0xff]  ;;  %v3193_v37 = vld [vmem:[%s3438_s25 + $0x128] ss:$16 sps:$4 sm:$0xff]   ;;  %v3214_v62 = vld [vmem:[%s3438_s25 + $0x1ac] ss:$16 sps:$4 sm:$0xff]  }
  0x30   : > { %1335 = vmatprep.mubr.bf16.mxu1 %v3142_v38  ;;  %1629 = vperm.xlu0 %3100, %v1563_v0   ;;  %v3194_v38 = vld [vmem:[%s3438_s25 + $0x144] ss:$16 sps:$4 sm:$0xff]   ;;  %v3210_v59 = vld [vmem:[%s3438_s25 + $0x180] ss:$16 sps:$4 sm:$0xff]   ;;  %v3217_v0 = vld [vmem:[%s3438_s25 + $0x1a8] ss:$16 sps:$4 sm:$0xff]  }
  0x31   : > { %1654 = vperm.xlu1 %3101, %v1568_v11   ;;  %2980 = vmatpush3.bf16.msra.mxu0 %v3230_v17  ;;  %v3212_v61 = vld [vmem:[%s3438_s25 + $0x1a4] ss:$16 sps:$4 sm:$0xff]   ;;  %v3222_v3 = vld [vmem:[%s3438_s25 + $0x1c0] ss:$16 sps:$4 sm:$0xff]   ;;  %v3226_v6 = vld [vmem:[%s3438_s25 + $0x1ec] ss:$16 sps:$4 sm:$0xff]  }
  0x32   : > { %2981 = vmatprep.subr.bf16.mxu0 %v3231_v20 }
  0x34   : > { %1639 = vperm.xlu0 %3100, %v1565_v5   ;;  %v3224_v5 = vld [vmem:[%s3438_s25 + $0x1e4] ss:$16 sps:$4 sm:$0xff]  }
  0x35   : > { %1664 = vperm.xlu1 %3101, %v1570_v14   ;;  %2982 = vmatpush3.bf16.msra.mxu0 %v3231_v20  ;;  %v3578_v20 = vld [vmem:[%s3798_s3] ss:$0 sm:$0xff] }
  0x36   : > { %1175 = vmatmul.mubr.bf16.gmra.mxu0 %v3144_v39  ;;  %2983 = vmatprep.subr.bf16.mxu0 %v3232_v23  ;;  %v1580_v39 = vld [vmem:[%s3468_s17 + $0xc8] sm:$0xff] }
  0x37   : > { %1336 = vmatmul.mubr.bf16.gmra.mxu1 %v3145_v40  ;;  %1182 = vmatprep.mubr.bf16.mxu0 %v3146_v41  ;;  %v3196_v40 = vld [vmem:[%s3438_s25 + $0x14c] ss:$16 sps:$4 sm:$0xff]   ;;  %v1581_v41 = vld [vmem:[%s3468_s17 + $0xd0] sm:$0xff] }
  0x38   : > { %1343 = vmatprep.mubr.bf16.mxu1 %v3148_v42  ;;  %1649 = vperm.xlu0 %3100, %v1567_v8   ;;  %v1582_v42 = vld [vmem:[%s3468_s17 + $0xd8] sm:$0xff] }
  0x39   : > { %1674 = vperm.xlu1 %3101, %v1572_v22   ;;  %2984 = vmatpush3.bf16.msra.mxu0 %v3232_v23  ;;  %v3229_v8 = vld [vmem:[%s3438_s25 + $0x1e8] ss:$16 sps:$4 sm:$0xff]  }
  0x3a   : > { %2985 = vmatprep.subr.bf16.mxu0 %v3233_v36 }
  0x3c   : > { %1659 = vperm.xlu0 %3100, %v1569_v13  }
  0x3d   : > { %1684 = vperm.xlu1 %3101, %v1574_v25   ;;  %2986 = vmatpush3.bf16.msra.mxu0 %v3233_v36 }
  0x3e   : > { %1183 = vmatmul.mubr.bf16.gmra.mxu0 %v3150_v43  ;;  %v3234_v43 = vld [vmem:[%s3799_s4 + $0x18] sm:$0xff]  }
  0x3f   : > { %1344 = vmatmul.mubr.bf16.gmra.mxu1 %v3151_v44  ;;  %1190 = vmatprep.mubr.bf16.mxu0 %v3152_v45  ;;  %v3198_v44 = vld [vmem:[%s3438_s25 + $0x140] ss:$16 sps:$4 sm:$0xff]  }
  0x40   : > { %1351 = vmatprep.mubr.bf16.mxu1 %v3154_v46  ;;  %1669 = vperm.xlu0 %3100, %v1571_v16   ;;  %v1583_v45 = vld [vmem:[%s3468_s17 + $0xe0] sm:$0xff]  ;;  %v3199_v46 = vld [vmem:[%s3438_s25 + $0x148] ss:$16 sps:$4 sm:$0xff]  }
  0x41   : > { %1694 = vperm.xlu1 %3101, %v1576_v30   ;;  %2987 = vmatprep.subr.bf16.mxu0 %v3234_v43 }
  0x42   : > { %2988 = vmatpush3.bf16.msra.mxu0 %v3234_v43 }
  0x44   : > { %1679 = vperm.xlu0 %3100, %v1573_v24  }
  0x45   : > { %1704 = vperm.xlu1 %3101, %v1578_v33  }
  0x46   : > { %1191 = vmatmul.mubr.bf16.gmra.mxu0 %v3156_v47  ;;  %v3200_v47 = vld [vmem:[%s3438_s25 + $0x164] ss:$16 sps:$4 sm:$0xff]  }
  0x47   : > { %1352 = vmatmul.mubr.bf16.gmra.mxu1 %v3157_v48  ;;  %1198 = vmatprep.mubr.bf16.mxu0 %v3158_v49  ;;  %v1584_v48 = vld [vmem:[%s3468_s17 + $0xe8] sm:$0xff] }
  0x48   : > { %1359 = vmatprep.mubr.bf16.mxu1 %v3160_v50  ;;  %1689 = vperm.xlu0 %3100, %v1575_v27   ;;  %v3202_v49 = vld [vmem:[%s3438_s25 + $0x16c] ss:$16 sps:$4 sm:$0xff]   ;;  %v3235_v50 = vld [vmem:[%s3799_s4 + $0x10] sm:$0xff]  }
  0x49   : > { %1714 = vperm.xlu1 %3101, %v1580_v39   ;;  %2989 = vmatprep.subr.bf16.mxu0 %v3235_v50 }
  0x4a   : > { %2990 = vmatpush3.bf16.msra.mxu0 %v3235_v50  ;;  %v3240_v50 = vld [vmem:[%s3801_s6 + $0x28] sm:$0xff]  }
  0x4b   : > { %2991 = vmatprep.subr.bf16.mxu0 %v3236_v53 }
  0x4c   : > { %1699 = vperm.xlu0 %3100, %v1577_v32  }
  0x4d   : > { %1724 = vperm.xlu1 %3101, %v1582_v42  }
  0x4e   : > { %1199 = vmatmul.mubr.bf16.gmra.mxu0 %v3162_v55  ;;  %v3205_v55 = vld [vmem:[%s3438_s25 + $0x168] ss:$16 sps:$4 sm:$0xff]  }
  0x4f   : > { %1360 = vmatmul.mubr.bf16.gmra.mxu1 %v3163_v57  ;;  %1206 = vmatprep.mubr.bf16.mxu0 %v3164_v58  ;;  %v3208_v57 = vld [vmem:[%s3438_s25 + $0x18c] ss:$16 sps:$4 sm:$0xff]   ;;  %v3237_v58 = vld [vmem:[%s3799_s4] sm:$0xff]  }
  0x50   : > { %1367 = vmatprep.mubr.bf16.mxu1 %v3166_v60  ;;  %1709 = vperm.xlu0 %3100, %v1579_v35   ;;  %v3211_v60 = vld [vmem:[%s3438_s25 + $0x188] ss:$16 sps:$4 sm:$0xff]  }
  0x51   : > { %1734 = vperm.xlu1 %3101, %v1584_v48   ;;  %2992 = vmatpush3.bf16.msra.mxu0 %v3236_v53 }
  0x52   : > { %2993 = vmatprep.subr.bf16.mxu0 %v3237_v58 }
  0x54   : > { %1719 = vperm.xlu0 %3100, %v1581_v41  }
  0x55   : > { %1744 = vperm.xlu1 %3101, %v1586_v52   ;;  %2994 = vmatpush3.bf16.msra.mxu0 %v3237_v58 }
  0x56   : > { %1207 = vmatmul.mubr.bf16.gmra.mxu0 %v3168_v63  ;;  %v3216_v63 = vld [vmem:[%s3438_s25 + $0x1a0] ss:$16 sps:$4 sm:$0xff]  }
  0x57   : > { %1368 = vmatmul.mubr.bf16.gmra.mxu1 %v3169_v1  ;;  %1214 = vmatprep.mubr.bf16.mxu0 %v3170_v2  ;;  %v3218_v1 = vld [vmem:[%s3438_s25 + $0x1c4] ss:$16 sps:$4 sm:$0xff]   ;;  %v3220_v2 = vld [vmem:[%s3438_s25 + $0x1cc] ss:$16 sps:$4 sm:$0xff]  }
  0x58   : > { %1375 = vmatprep.mubr.bf16.mxu1 %v3172_v4  ;;  %1729 = vperm.xlu0 %3100, %v1583_v45   ;;  %v3223_v4 = vld [vmem:[%s3438_s25 + $0x1c8] ss:$16 sps:$4 sm:$0xff]  }
  0x5c   : > { %1739 = vperm.xlu0 %3100, %v1585_v51  }
  0x5e   : > { %1215 = vmatmul.mubr.bf16.gmra.mxu0 %v3174_v7  ;;  %v3228_v7 = vld [vmem:[%s3438_s25 + $0x1e0] ss:$16 sps:$4 sm:$0xff]  }
  0x5f   : > { %1376 = vmatmul.mubr.bf16.gmra.mxu1 %v3175_v9  ;;  %1222 = vmatprep.mubr.bf16.mxu0 %v3176_v10 }
  0x60   : > { %1383 = vmatprep.mubr.bf16.mxu1 %v3178_v12 }
  0x66   : > { %1223 = vmatmul.mubr.bf16.gmra.mxu0 %v3180_v15 }
  0x67   : > { %1384 = vmatmul.mubr.bf16.gmra.mxu1 %v3181_v18  ;;  %1230 = vmatprep.mubr.bf16.mxu0 %v3182_v19 }
  0x68   : > { %1391 = vmatprep.mubr.bf16.mxu1 %v3184_v21 }
  0x6e   : > { %1231 = vmatmul.mubr.bf16.gmra.mxu0 %v3186_v26 }
  0x6f   : > { %1392 = vmatmul.mubr.bf16.gmra.mxu1 %v3187_v28  ;;  %1238 = vmatprep.mubr.bf16.mxu0 %v3188_v29 }
  0x70   : > { %1399 = vmatprep.mubr.bf16.mxu1 %v3190_v31 }
  0x76   : > { %1239 = vmatmul.mubr.bf16.gmra.mxu0 %v3192_v34 }
  0x77   : > { %1400 = vmatmul.mubr.bf16.gmra.mxu1 %v3193_v37  ;;  %1246 = vmatprep.mubr.bf16.mxu0 %v3194_v38  ;;  %v3238_v37 = vld [vmem:[%s3801_s6 + $0x38] sm:$0xff]   ;;  %v3239_v38 = vld [vmem:[%s3801_s6 + $0x30] sm:$0xff]  }
  0x78   : > { %1407 = vmatprep.mubr.bf16.mxu1 %v3196_v40  ;;  %3027 = vmatprep.subr.bf16.mxu1 %v3238_v37 }
  0x79   : > { %3028 = vmatpush3.bf16.msra.mxu1 %v3238_v37 }
  0x7a   : > { %3029 = vmatprep.subr.bf16.mxu1 %v3239_v38 }
  0x7d   : > { %3030 = vmatpush3.bf16.msra.mxu1 %v3239_v38 }
  0x7e   : > { %1247 = vmatmul.mubr.bf16.gmra.mxu0 %v3198_v44  ;;  %3031 = vmatprep.subr.bf16.mxu1 %v3240_v50 }
  0x7f   : > { %1408 = vmatmul.mubr.bf16.gmra.mxu1 %v3199_v46  ;;  %1254 = vmatprep.mubr.bf16.mxu0 %v3200_v47 }
  0x80   : > { %1415 = vmatprep.mubr.bf16.mxu1 %v3202_v49 }
  0x81   : > { %3032 = vmatpush3.bf16.msra.mxu1 %v3240_v50 }
  0x86   : > { %1255 = vmatmul.mubr.bf16.gmra.mxu0 %v3204_v54 }
  0x87   : > { %1416 = vmatmul.mubr.bf16.gmra.mxu1 %v3205_v55  ;;  %1262 = vmatprep.mubr.bf16.mxu0 %v3206_v56 }
  0x88   : > { %1423 = vmatprep.mubr.bf16.mxu1 %v3208_v57 }
  0x8e   : > { %1263 = vmatmul.mubr.bf16.gmra.mxu0 %v3210_v59 }
  0x8f   : > { %1424 = vmatmul.mubr.bf16.gmra.mxu1 %v3211_v60  ;;  %1270 = vmatprep.mubr.bf16.mxu0 %v3212_v61 }
  0x90   : > { %1431 = vmatprep.mubr.bf16.mxu1 %v3214_v62  ;;  %v1600_v39 = vpop.permute.xlu1 %1599 }
  0x95   : > { %v1605_v56 = vpop.permute.xlu1 %1604 }
  0x96   : > { %1271 = vmatmul.mubr.bf16.gmra.mxu0 %v3216_v63  ;;  %v3241_v63 = vld [vmem:[%s3801_s6 + $0x20] sm:$0xff]  }
  0x97   : > { %1432 = vmatmul.mubr.bf16.gmra.mxu1 %v3217_v0  ;;  %1278 = vmatprep.mubr.bf16.mxu0 %v3218_v1 }
  0x98   : > { %1439 = vmatprep.mubr.bf16.mxu1 %v3220_v2  ;;  %3033 = vmatprep.subr.bf16.mxu1 %v3241_v63 }
  0x99   : > { %3034 = vmatpush3.bf16.msra.mxu1 %v3241_v63 }
  0x9a   : > { %v1590_v14 = vpop.permute.xlu0 %1589 }
  0x9e   : > { %1279 = vmatmul.mubr.bf16.gmra.mxu0 %v3222_v3  ;;  %v1595_v27 = vpop.permute.xlu0 %1594 }
  0x9f   : > { %1440 = vmatmul.mubr.bf16.gmra.mxu1 %v3223_v4  ;;  %1286 = vmatprep.mubr.bf16.mxu0 %v3224_v5 }
  0xa0   : > { %1447 = vmatprep.mubr.bf16.mxu1 %v3226_v6 }
  0xa2   : > { %v1610_v4 = vpop.permute.xlu0 %1609 }
  0xa6   : > { %1287 = vmatmul.mubr.bf16.gmra.mxu0 %v3228_v7 }
  0xa7   : > { %1448 = vmatmul.mubr.bf16.gmra.mxu1 %v3229_v8 }
  0xee   : > { %v2723_v9 = vpop.f32.mrf.mxu0 }
  0xef   : > { %v2835_v10 = vpop.f32.mrf.mxu1 }
  0xf0   : > { %v2724_v11 = vpop.f32.mrf.mxu0 }
  0xf1   : > { %v2725_v12 = vadd.f32 %v2724_v11, %v2723_v9  ;;  %v2836_v13 = vpop.f32.mrf.mxu1  ;;  %v3242_v11 = vld [vmem:[%s3801_s6 + $0x18] sm:$0xff]  }
  0xf2   : > { %v2837_v15 = vadd.f32 %v2836_v13, %v2835_v10  ;;  %v2726_v16 = vpop.f32.mrf.mxu0  ;;  %3035 = vmatprep.subr.bf16.mxu1 %v3242_v11 }
  0xf3   : > { %v2838_v17 = vpop.f32.mrf.mxu1  ;;  %3036 = vmatpush3.bf16.msra.mxu1 %v3242_v11 }
  0xf4   : > { %v1330_v18 = vadd.f32 %v2837_v15, %v2725_v12  ;;  %v2727_v19 = vpop.f32.mrf.mxu0 }
  0xf5   : > { %v2728_v21 = vadd.f32 %v2727_v19, %v2726_v16  ;;  %v2839_v22 = vpop.f32.mrf.mxu1 }
  0xf6   : > { %v1747_v23 = vmul.f32 %v1590_v14, %v1330_v18  ;;  %v2840_v24 = vadd.f32 %v2839_v22, %v2838_v17  ;;  %v2729_v25 = vpop.f32.mrf.mxu0  ;;  %v1615_v17 = vpop.permute.xlu1 %1614 }
  0xf7   : > { %v2841_v26 = vpop.f32.mrf.mxu1 }
  0xf8   : > { %v1786_v28 = vadd.f32 %v3578_v20, %v1747_v23  ;;  %v1333_v29 = vadd.f32 %v2840_v24, %v2728_v21  ;;  %v2730_v30 = vpop.f32.mrf.mxu0 }
  0xf9   : > { %v2731_v31 = vadd.f32 %v2730_v30, %v2729_v25  ;;  %v2842_v32 = vpop.f32.mrf.mxu1 }
  0xfa   : > { %v1818_v33 = vmax.f32 %v1786_v28, 0.0  ;;  %v1748_v34 = vmul.f32 %v1595_v27, %v1333_v29  ;;  %v2843_v35 = vadd.f32 %v2842_v32, %v2841_v26  ;;  %v2732_v36 = vpop.f32.mrf.mxu0  ;;  %v1620_v29 = vpop.permute.xlu0 %1619 }
  0xfb   : > { %v2844_v40 = vpop.f32.mrf.mxu1 }
  0xfc   : > { %1850 = vst [vmem:[%s3585_s30] sm:$0xff] %v1818_v33  ;;  %v1787_v41 = vadd.f32 %v3578_v20, %v1748_v34  ;;  %v1338_v42 = vadd.f32 %v2843_v35, %v2731_v31  ;;  %v2733_v43 = vpop.f32.mrf.mxu0 }
  0xfd   : > { %v2734_v44 = vadd.f32 %v2733_v43, %v2732_v36  ;;  %v2845_v45 = vpop.f32.mrf.mxu1 }
  0xfe   : > { %v1819_v46 = vmax.f32 %v1787_v41, 0.0  ;;  %v1749_v47 = vmul.f32 %v1600_v39, %v1338_v42  ;;  %v2846_v48 = vadd.f32 %v2845_v45, %v2844_v40  ;;  %v2735_v49 = vpop.f32.mrf.mxu0  ;;  %v1625_v41 = vpop.permute.xlu1 %1624 }
  0xff   : > { %v2847_v51 = vpop.f32.mrf.mxu1 }
 0x100   : > { %1851 = vst [vmem:[%s3585_s30 + $0x8] sm:$0xff] %v1819_v46  ;;  %v1788_v52 = vadd.f32 %v3578_v20, %v1749_v47  ;;  %v1341_v53 = vadd.f32 %v2846_v48, %v2734_v44  ;;  %v2736_v54 = vpop.f32.mrf.mxu0  ;;  %v1882_v55 = vpack.c.bf16 %v1819_v46, %v1818_v33 }
 0x101   : > { %v2737_v57 = vadd.f32 %v2736_v54, %v2735_v49  ;;  %v2848_v58 = vpop.f32.mrf.mxu1 }
 0x102   : > { %v1820_v59 = vmax.f32 %v1788_v52, 0.0  ;;  %v1750_v60 = vmul.f32 %v1605_v56, %v1341_v53  ;;  %v2849_v61 = vadd.f32 %v2848_v58, %v2847_v51  ;;  %2995 = vmatprep.mubr.bf16.mxu0 %v1882_v55  ;;  %v2738_v62 = vpop.f32.mrf.mxu0  ;;  %v1630_v52 = vpop.permute.xlu0 %1629 }
 0x103   : > { %v2850_v0 = vpop.f32.mrf.mxu1 }
 0x104   : > { %1852 = vst [vmem:[%s3585_s30 + $0x10] sm:$0xff] %v1820_v59  ;;  %v1789_v1 = vadd.f32 %v3578_v20, %v1750_v60  ;;  %v1346_v2 = vadd.f32 %v2849_v61, %v2737_v57  ;;  %v2739_v3 = vpop.f32.mrf.mxu0 }
 0x105   : > { %v2740_v5 = vadd.f32 %v2739_v3, %v2738_v62  ;;  %v2851_v6 = vpop.f32.mrf.mxu1 }
 0x106   : > { %v1821_v7 = vmax.f32 %v1789_v1, 0.0  ;;  %v1751_v8 = vmul.f32 %v1610_v4, %v1346_v2  ;;  %v2852_v9 = vadd.f32 %v2851_v6, %v2850_v0  ;;  %v2741_v10 = vpop.f32.mrf.mxu0  ;;  %v1635_v0 = vpop.permute.xlu1 %1634 }
 0x107   : > { %v2853_v12 = vpop.f32.mrf.mxu1  ;;  %v1640_v11 = vpop.permute.xlu0 %1639 }
 0x108   : > { %1853 = vst [vmem:[%s3585_s30 + $0x18] sm:$0xff] %v1821_v7  ;;  %v1883_v13 = vpack.c.bf16 %v1821_v7, %v1820_v59  ;;  %v1349_v14 = vadd.f32 %v2852_v9, %v2740_v5  ;;  %v2742_v15 = vpop.f32.mrf.mxu0  ;;  %v1790_v16 = vadd.f32 %v3578_v20, %v1751_v8 }
 0x109   : > { %v2743_v18 = vadd.f32 %v2742_v15, %v2741_v10  ;;  %v2854_v19 = vpop.f32.mrf.mxu1 }
 0x10a   : > { %v1752_v21 = vmul.f32 %v1615_v17, %v1349_v14  ;;  %v2855_v22 = vadd.f32 %v2854_v19, %v2853_v12  ;;  %2996 = vmatmul.mubr.bf16.vlgmr.msra.gmra.mxu0 %v1883_v13  ;;  %v2744_v23 = vpop.f32.mrf.mxu0  ;;  %v1822_v24 = vmax.f32 %v1790_v16, 0.0 }
 0x10b   : > { %v2856_v25 = vpop.f32.mrf.mxu1 }
 0x10c   : > { %v1354_v26 = vadd.f32 %v2855_v22, %v2743_v18  ;;  %v2745_v27 = vpop.f32.mrf.mxu0  ;;  %v1791_v28 = vadd.f32 %v3578_v20, %v1752_v21  ;;  %1854 = vst [vmem:[%s3585_s30 + $0x20] sm:$0xff] %v1822_v24 }
 0x10d   : > { %v2746_v30 = vadd.f32 %v2745_v27, %v2744_v23  ;;  %v2857_v31 = vpop.f32.mrf.mxu1 }
 0x10e   : > { %v1753_v32 = vmul.f32 %v1620_v29, %v1354_v26  ;;  %v2858_v33 = vadd.f32 %v2857_v31, %v2856_v25  ;;  %v2747_v34 = vpop.f32.mrf.mxu0  ;;  %v1823_v35 = vmax.f32 %v1791_v28, 0.0 }
 0x10f   : > { %v2859_v36 = vpop.f32.mrf.mxu1 }
 0x110   : > { %v1357_v37 = vadd.f32 %v2858_v33, %v2746_v30  ;;  %v2748_v38 = vpop.f32.mrf.mxu0  ;;  %1855 = vst [vmem:[%s3585_s30 + $0x28] sm:$0xff] %v1823_v35  ;;  %v1884_v39 = vpack.c.bf16 %v1823_v35, %v1822_v24  ;;  %v1792_v40 = vadd.f32 %v3578_v20, %v1753_v32  ;;  %v1645_v24 = vpop.permute.xlu1 %1644 }
 0x111   : > { %v2749_v42 = vadd.f32 %v2748_v38, %v2747_v34  ;;  %v2860_v43 = vpop.f32.mrf.mxu1  ;;  %v1650_v35 = vpop.permute.xlu0 %1649 }
 0x112   : > { %v1754_v44 = vmul.f32 %v1625_v41, %v1357_v37  ;;  %v2861_v45 = vadd.f32 %v2860_v43, %v2859_v36  ;;  %2999 = vmatprep.mubr.bf16.mxu0 %v1884_v39  ;;  %v2750_v46 = vpop.f32.mrf.mxu0  ;;  %v1824_v47 = vmax.f32 %v1792_v40, 0.0 }
 0x113   : > { %v2862_v48 = vpop.f32.mrf.mxu1 }
 0x114   : > { %v1362_v49 = vadd.f32 %v2861_v45, %v2749_v42  ;;  %v2751_v50 = vpop.f32.mrf.mxu0  ;;  %v1793_v51 = vadd.f32 %v3578_v20, %v1754_v44  ;;  %1856 = vst [vmem:[%s3585_s30 + $0x30] sm:$0xff] %v1824_v47 }
 0x115   : > { %v2752_v53 = vadd.f32 %v2751_v50, %v2750_v46  ;;  %v2863_v54 = vpop.f32.mrf.mxu1 }
 0x116   : > { %v1755_v55 = vmul.f32 %v1630_v52, %v1362_v49  ;;  %v2864_v56 = vadd.f32 %v2863_v54, %v2862_v48  ;;  %v2753_v57 = vpop.f32.mrf.mxu0  ;;  %v1825_v58 = vmax.f32 %v1793_v51, 0.0 }
 0x117   : > { %v2865_v59 = vpop.f32.mrf.mxu1 }
 0x118   : > { %v1365_v60 = vadd.f32 %v2864_v56, %v2752_v53  ;;  %v2754_v61 = vpop.f32.mrf.mxu0  ;;  %1857 = vst [vmem:[%s3585_s30 + $0x38] sm:$0xff] %v1825_v58  ;;  %v1885_v62 = vpack.c.bf16 %v1825_v58, %v1824_v47  ;;  %v1794_v63 = vadd.f32 %v3578_v20, %v1755_v55  ;;  %v1655_v47 = vpop.permute.xlu1 %1654 }
 0x119   : > { %v2755_v1 = vadd.f32 %v2754_v61, %v2753_v57  ;;  %v2866_v2 = vpop.f32.mrf.mxu1  ;;  %v1660_v58 = vpop.permute.xlu0 %1659 }
 0x11a   : > { %v1756_v3 = vmul.f32 %v1635_v0, %v1365_v60  ;;  %v2867_v4 = vadd.f32 %v2866_v2, %v2865_v59  ;;  %3000 = vmatmul.mubr.bf16.gmra.mxu0 %v1885_v62  ;;  %v2756_v5 = vpop.f32.mrf.mxu0  ;;  %v1826_v6 = vmax.f32 %v1794_v63, 0.0 }
 0x11b   : > { %v2868_v7 = vpop.f32.mrf.mxu1 }
 0x11c   : > { %v1370_v8 = vadd.f32 %v2867_v4, %v2755_v1  ;;  %v2757_v9 = vpop.f32.mrf.mxu0  ;;  %v1795_v10 = vadd.f32 %v3578_v20, %v1756_v3  ;;  %1858 = vst [vmem:[%s3585_s30 + $0x40] sm:$0xff] %v1826_v6 }
 0x11d   : > { %v2758_v12 = vadd.f32 %v2757_v9, %v2756_v5  ;;  %v2869_v13 = vpop.f32.mrf.mxu1 }
 0x11e   : > { %v1757_v14 = vmul.f32 %v1640_v11, %v1370_v8  ;;  %v2870_v15 = vadd.f32 %v2869_v13, %v2868_v7  ;;  %v2759_v16 = vpop.f32.mrf.mxu0  ;;  %v1827_v17 = vmax.f32 %v1795_v10, 0.0 }
 0x11f   : > { %v2871_v18 = vpop.f32.mrf.mxu1 }
 0x120   : > { %v1373_v19 = vadd.f32 %v2870_v15, %v2758_v12  ;;  %v2760_v21 = vpop.f32.mrf.mxu0  ;;  %1859 = vst [vmem:[%s3585_s30 + $0x48] sm:$0xff] %v1827_v17  ;;  %v1886_v22 = vpack.c.bf16 %v1827_v17, %v1826_v6  ;;  %v1796_v23 = vadd.f32 %v3578_v20, %v1757_v14  ;;  %v1665_v6 = vpop.permute.xlu1 %1664 }
 0x121   : > { %v2761_v25 = vadd.f32 %v2760_v21, %v2759_v16  ;;  %v2872_v26 = vpop.f32.mrf.mxu1  ;;  %v1670_v17 = vpop.permute.xlu0 %1669 }
 0x122   : > { %v1758_v27 = vmul.f32 %v1645_v24, %v1373_v19  ;;  %v2873_v28 = vadd.f32 %v2872_v26, %v2871_v18  ;;  %3003 = vmatprep.mubr.bf16.mxu0 %v1886_v22  ;;  %v2762_v29 = vpop.f32.mrf.mxu0  ;;  %v1828_v30 = vmax.f32 %v1796_v23, 0.0 }
 0x123   : > { %v2874_v31 = vpop.f32.mrf.mxu1 }
 0x124   : > { %v1378_v32 = vadd.f32 %v2873_v28, %v2761_v25  ;;  %v2763_v33 = vpop.f32.mrf.mxu0  ;;  %v1797_v34 = vadd.f32 %v3578_v20, %v1758_v27  ;;  %1860 = vst [vmem:[%s3585_s30 + $0x50] sm:$0xff] %v1828_v30 }
 0x125   : > { %v2764_v36 = vadd.f32 %v2763_v33, %v2762_v29  ;;  %v2875_v37 = vpop.f32.mrf.mxu1 }
 0x126   : > { %v1759_v38 = vmul.f32 %v1650_v35, %v1378_v32  ;;  %v2876_v39 = vadd.f32 %v2875_v37, %v2874_v31  ;;  %v2765_v40 = vpop.f32.mrf.mxu0  ;;  %v1829_v41 = vmax.f32 %v1797_v34, 0.0 }
 0x127   : > { %v2877_v42 = vpop.f32.mrf.mxu1 }
 0x128   : > { %v1381_v43 = vadd.f32 %v2876_v39, %v2764_v36  ;;  %v2766_v44 = vpop.f32.mrf.mxu0  ;;  %1861 = vst [vmem:[%s3585_s30 + $0x58] sm:$0xff] %v1829_v41  ;;  %v1887_v45 = vpack.c.bf16 %v1829_v41, %v1828_v30  ;;  %v1798_v46 = vadd.f32 %v3578_v20, %v1759_v38  ;;  %v1675_v30 = vpop.permute.xlu1 %1674 }
 0x129   : > { %v2767_v48 = vadd.f32 %v2766_v44, %v2765_v40  ;;  %v2878_v49 = vpop.f32.mrf.mxu1  ;;  %v1680_v41 = vpop.permute.xlu0 %1679 }
 0x12a   : > { %v1760_v50 = vmul.f32 %v1655_v47, %v1381_v43  ;;  %v2879_v51 = vadd.f32 %v2878_v49, %v2877_v42  ;;  %3004 = vmatmul.mubr.bf16.gmra.mxu0 %v1887_v45  ;;  %v2768_v52 = vpop.f32.mrf.mxu0  ;;  %v1830_v53 = vmax.f32 %v1798_v46, 0.0 }
 0x12b   : > { %v2880_v54 = vpop.f32.mrf.mxu1 }
 0x12c   : > { %v1386_v55 = vadd.f32 %v2879_v51, %v2767_v48  ;;  %v2769_v56 = vpop.f32.mrf.mxu0  ;;  %v1799_v57 = vadd.f32 %v3578_v20, %v1760_v50  ;;  %1862 = vst [vmem:[%s3585_s30 + $0x60] sm:$0xff] %v1830_v53 }
 0x12d   : > { %v2770_v59 = vadd.f32 %v2769_v56, %v2768_v52  ;;  %v2881_v60 = vpop.f32.mrf.mxu1 }
 0x12e   : > { %v1761_v61 = vmul.f32 %v1660_v58, %v1386_v55  ;;  %v2882_v62 = vadd.f32 %v2881_v60, %v2880_v54  ;;  %v2771_v63 = vpop.f32.mrf.mxu0  ;;  %v1831_v0 = vmax.f32 %v1799_v57, 0.0 }
 0x12f   : > { %v2883_v1 = vpop.f32.mrf.mxu1 }
 0x130   : > { %v1389_v2 = vadd.f32 %v2882_v62, %v2770_v59  ;;  %v2772_v3 = vpop.f32.mrf.mxu0  ;;  %1863 = vst [vmem:[%s3585_s30 + $0x68] sm:$0xff] %v1831_v0  ;;  %v1888_v4 = vpack.c.bf16 %v1831_v0, %v1830_v53  ;;  %v1800_v5 = vadd.f32 %v3578_v20, %v1761_v61  ;;  %v1685_v53 = vpop.permute.xlu1 %1684 }
 0x131   : > { %v2773_v7 = vadd.f32 %v2772_v3, %v2771_v63  ;;  %v2884_v8 = vpop.f32.mrf.mxu1  ;;  %v1690_v0 = vpop.permute.xlu0 %1689 }
 0x132   : > { %v1762_v9 = vmul.f32 %v1665_v6, %v1389_v2  ;;  %v2885_v10 = vadd.f32 %v2884_v8, %v2883_v1  ;;  %3007 = vmatprep.mubr.bf16.mxu0 %v1888_v4  ;;  %v2774_v11 = vpop.f32.mrf.mxu0  ;;  %v1832_v12 = vmax.f32 %v1800_v5, 0.0 }
 0x133   : > { %v2886_v13 = vpop.f32.mrf.mxu1 }
 0x134   : > { %v1394_v14 = vadd.f32 %v2885_v10, %v2773_v7  ;;  %v2775_v15 = vpop.f32.mrf.mxu0  ;;  %v1801_v16 = vadd.f32 %v3578_v20, %v1762_v9  ;;  %1864 = vst [vmem:[%s3585_s30 + $0x70] sm:$0xff] %v1832_v12 }
 0x135   : > { %v2776_v18 = vadd.f32 %v2775_v15, %v2774_v11  ;;  %v2887_v19 = vpop.f32.mrf.mxu1 }
 0x136   : > { %v1763_v21 = vmul.f32 %v1670_v17, %v1394_v14  ;;  %v2888_v22 = vadd.f32 %v2887_v19, %v2886_v13  ;;  %v2777_v23 = vpop.f32.mrf.mxu0  ;;  %v1833_v24 = vmax.f32 %v1801_v16, 0.0  ;;  %v3243_v19 = vld [vmem:[%s3801_s6 + $0x10] sm:$0xff]  }
 0x137   : > { %v2889_v25 = vpop.f32.mrf.mxu1  ;;  %3037 = vmatprep.subr.bf16.mxu1 %v3243_v19 }
 0x138   : > { %v1397_v26 = vadd.f32 %v2888_v22, %v2776_v18  ;;  %v2778_v27 = vpop.f32.mrf.mxu0  ;;  %1865 = vst [vmem:[%s3585_s30 + $0x78] sm:$0xff] %v1833_v24  ;;  %v1889_v28 = vpack.c.bf16 %v1833_v24, %v1832_v12  ;;  %v1802_v29 = vadd.f32 %v3578_v20, %v1763_v21  ;;  %v1695_v12 = vpop.permute.xlu1 %1694  ;;  %3038 = vmatpush3.bf16.msra.mxu1 %v3243_v19 }
 0x139   : > { %v2779_v31 = vadd.f32 %v2778_v27, %v2777_v23  ;;  %v2890_v32 = vpop.f32.mrf.mxu1 }
 0x13a   : > { %v1764_v33 = vmul.f32 %v1675_v30, %v1397_v26  ;;  %v2891_v34 = vadd.f32 %v2890_v32, %v2889_v25  ;;  %3008 = vmatmul.mubr.bf16.gmra.mxu0 %v1889_v28  ;;  %v2780_v35 = vpop.f32.mrf.mxu0  ;;  %v1834_v36 = vmax.f32 %v1802_v29, 0.0  ;;  %v1700_v25 = vpop.permute.xlu0 %1699  ;;  %v3244_v32 = vld [vmem:[%s3801_s6 + $0x8] sm:$0xff]  }
 0x13b   : > { %v2892_v37 = vpop.f32.mrf.mxu1  ;;  %3039 = vmatprep.subr.bf16.mxu1 %v3244_v32 }
 0x13c   : > { %v1402_v38 = vadd.f32 %v2891_v34, %v2779_v31  ;;  %v2781_v39 = vpop.f32.mrf.mxu0  ;;  %v1803_v40 = vadd.f32 %v3578_v20, %v1764_v33  ;;  %1866 = vst [vmem:[%s3585_s30 + $0x80] sm:$0xff] %v1834_v36  ;;  %3040 = vmatpush3.bf16.msra.mxu1 %v3244_v32 }
 0x13d   : > { %v2782_v42 = vadd.f32 %v2781_v39, %v2780_v35  ;;  %v2893_v43 = vpop.f32.mrf.mxu1 }
 0x13e   : > { %v1765_v44 = vmul.f32 %v1680_v41, %v1402_v38  ;;  %v2894_v45 = vadd.f32 %v2893_v43, %v2892_v37  ;;  %v2783_v46 = vpop.f32.mrf.mxu0  ;;  %v1835_v47 = vmax.f32 %v1803_v40, 0.0  ;;  %v1705_v38 = vpop.permute.xlu1 %1704 }
 0x13f   : > { %v2895_v48 = vpop.f32.mrf.mxu1 }
 0x140   : > { %v1405_v49 = vadd.f32 %v2894_v45, %v2782_v42  ;;  %v2784_v50 = vpop.f32.mrf.mxu0  ;;  %1867 = vst [vmem:[%s3585_s30 + $0x88] sm:$0xff] %v1835_v47  ;;  %v1890_v51 = vpack.c.bf16 %v1835_v47, %v1834_v36  ;;  %v1804_v52 = vadd.f32 %v3578_v20, %v1765_v44  ;;  %v3245_v45 = vld [vmem:[%s3801_s6] sm:$0xff]  }
 0x141   : > { %v2785_v54 = vadd.f32 %v2784_v50, %v2783_v46  ;;  %v2896_v55 = vpop.f32.mrf.mxu1  ;;  %3041 = vmatprep.subr.bf16.mxu1 %v3245_v45  ;;  %v1710_v50 = vpop.permute.xlu0 %1709 }
 0x142   : > { %v1766_v56 = vmul.f32 %v1685_v53, %v1405_v49  ;;  %v2897_v57 = vadd.f32 %v2896_v55, %v2895_v48  ;;  %3011 = vmatprep.mubr.bf16.mxu0 %v1890_v51  ;;  %v2786_v58 = vpop.f32.mrf.mxu0  ;;  %v1836_v59 = vmax.f32 %v1804_v52, 0.0  ;;  %3042 = vmatpush3.bf16.msra.mxu1 %v3245_v45 }
 0x143   : > { %v2898_v60 = vpop.f32.mrf.mxu1 }
 0x144   : > { %v1410_v61 = vadd.f32 %v2897_v57, %v2785_v54  ;;  %v2787_v62 = vpop.f32.mrf.mxu0  ;;  %v1805_v63 = vadd.f32 %v3578_v20, %v1766_v56  ;;  %1868 = vst [vmem:[%s3585_s30 + $0x90] sm:$0xff] %v1836_v59 }
 0x145   : > { %v2788_v1 = vadd.f32 %v2787_v62, %v2786_v58  ;;  %v2899_v2 = vpop.f32.mrf.mxu1  ;;  %v1715_v62 = vpop.permute.xlu1 %1714 }
 0x146   : > { %v1767_v3 = vmul.f32 %v1690_v0, %v1410_v61  ;;  %v2900_v4 = vadd.f32 %v2899_v2, %v2898_v60  ;;  %v2789_v5 = vpop.f32.mrf.mxu0  ;;  %v1837_v6 = vmax.f32 %v1805_v63, 0.0 }
 0x147   : > { %v2901_v7 = vpop.f32.mrf.mxu1 }
 0x148   : > { %v1413_v8 = vadd.f32 %v2900_v4, %v2788_v1  ;;  %v2790_v9 = vpop.f32.mrf.mxu0  ;;  %1869 = vst [vmem:[%s3585_s30 + $0x98] sm:$0xff] %v1837_v6  ;;  %v1891_v10 = vpack.c.bf16 %v1837_v6, %v1836_v59  ;;  %v1806_v11 = vadd.f32 %v3578_v20, %v1767_v3 }
 0x149   : > { %v2791_v13 = vadd.f32 %v2790_v9, %v2789_v5  ;;  %v2902_v14 = vpop.f32.mrf.mxu1  ;;  %v1720_v9 = vpop.permute.xlu0 %1719 }
 0x14a   : > { %v1768_v15 = vmul.f32 %v1695_v12, %v1413_v8  ;;  %v2903_v16 = vadd.f32 %v2902_v14, %v2901_v7  ;;  %3012 = vmatmul.mubr.bf16.gmra.mxu0 %v1891_v10  ;;  %v2792_v17 = vpop.f32.mrf.mxu0  ;;  %v1838_v18 = vmax.f32 %v1806_v11, 0.0 }
 0x14b   : > { %v2904_v21 = vpop.f32.mrf.mxu1 }
 0x14c   : > { %v1418_v22 = vadd.f32 %v2903_v16, %v2791_v13  ;;  %v2793_v23 = vpop.f32.mrf.mxu0  ;;  %v1807_v24 = vadd.f32 %v3578_v20, %v1768_v15  ;;  %1870 = vst [vmem:[%s3585_s30 + $0xa0] sm:$0xff] %v1838_v18 }
 0x14d   : > { %v2794_v26 = vadd.f32 %v2793_v23, %v2792_v17  ;;  %v2905_v27 = vpop.f32.mrf.mxu1 }
 0x14e   : > { %v1769_v28 = vmul.f32 %v1700_v25, %v1418_v22  ;;  %v2906_v29 = vadd.f32 %v2905_v27, %v2904_v21  ;;  %v2795_v30 = vpop.f32.mrf.mxu0  ;;  %v1839_v31 = vmax.f32 %v1807_v24, 0.0  ;;  %v1725_v22 = vpop.permute.xlu1 %1724 }
 0x14f   : > { %v2907_v33 = vpop.f32.mrf.mxu1 }
 0x150   : > { %v1421_v34 = vadd.f32 %v2906_v29, %v2794_v26  ;;  %v2796_v35 = vpop.f32.mrf.mxu0  ;;  %1871 = vst [vmem:[%s3585_s30 + $0xa8] sm:$0xff] %v1839_v31  ;;  %v1892_v36 = vpack.c.bf16 %v1839_v31, %v1838_v18  ;;  %v1808_v37 = vadd.f32 %v3578_v20, %v1769_v28 }
 0x151   : > { %v2797_v39 = vadd.f32 %v2796_v35, %v2795_v30  ;;  %v2908_v40 = vpop.f32.mrf.mxu1 }
 0x152   : > { %v1770_v41 = vmul.f32 %v1705_v38, %v1421_v34  ;;  %v2909_v42 = vadd.f32 %v2908_v40, %v2907_v33  ;;  %3015 = vmatprep.mubr.bf16.mxu0 %v1892_v36  ;;  %v2798_v43 = vpop.f32.mrf.mxu0  ;;  %v1840_v44 = vmax.f32 %v1808_v37, 0.0  ;;  %v1730_v33 = vpop.permute.xlu0 %1729 }
 0x153   : > { %v2910_v46 = vpop.f32.mrf.mxu1  ;;  %v1735_v45 = vpop.permute.xlu1 %1734 }
 0x154   : > { %v1426_v47 = vadd.f32 %v2909_v42, %v2797_v39  ;;  %v2799_v48 = vpop.f32.mrf.mxu0  ;;  %v1809_v49 = vadd.f32 %v3578_v20, %v1770_v41  ;;  %1872 = vst [vmem:[%s3585_s30 + $0xb0] sm:$0xff] %v1840_v44 }
 0x155   : > { %v2800_v51 = vadd.f32 %v2799_v48, %v2798_v43  ;;  %v2911_v52 = vpop.f32.mrf.mxu1 }
 0x156   : > { %v1771_v53 = vmul.f32 %v1710_v50, %v1426_v47  ;;  %v2912_v54 = vadd.f32 %v2911_v52, %v2910_v46  ;;  %v2801_v55 = vpop.f32.mrf.mxu0  ;;  %v1841_v56 = vmax.f32 %v1809_v49, 0.0 }
 0x157   : > { %v2913_v57 = vpop.f32.mrf.mxu1 }
 0x158   : > { %v1429_v58 = vadd.f32 %v2912_v54, %v2800_v51  ;;  %v2802_v59 = vpop.f32.mrf.mxu0  ;;  %1873 = vst [vmem:[%s3585_s30 + $0xb8] sm:$0xff] %v1841_v56  ;;  %v1893_v60 = vpack.c.bf16 %v1841_v56, %v1840_v44  ;;  %v1810_v61 = vadd.f32 %v3578_v20, %v1771_v53  ;;  %v1740_v56 = vpop.permute.xlu0 %1739 }
 0x159   : > { %v2803_v63 = vadd.f32 %v2802_v59, %v2801_v55  ;;  %v2914_v0 = vpop.f32.mrf.mxu1 }
 0x15a   : > { %v1772_v1 = vmul.f32 %v1715_v62, %v1429_v58  ;;  %v2915_v2 = vadd.f32 %v2914_v0, %v2913_v57  ;;  %3016 = vmatmul.mubr.bf16.gmra.mxu0 %v1893_v60  ;;  %v2804_v3 = vpop.f32.mrf.mxu0  ;;  %v1842_v4 = vmax.f32 %v1810_v61, 0.0 }
 0x15b   : > { %v2916_v5 = vpop.f32.mrf.mxu1 }
 0x15c   : > { %v1434_v6 = vadd.f32 %v2915_v2, %v2803_v63  ;;  %v2805_v7 = vpop.f32.mrf.mxu0  ;;  %v1811_v8 = vadd.f32 %v3578_v20, %v1772_v1  ;;  %1874 = vst [vmem:[%s3585_s30 + $0xc0] sm:$0xff] %v1842_v4  ;;  %v1745_v1 = vpop.permute.xlu1 %1744 }
 0x15d   : > { %v2806_v10 = vadd.f32 %v2805_v7, %v2804_v3  ;;  %v2917_v11 = vpop.f32.mrf.mxu1 }
 0x15e   : > { %v1773_v12 = vmul.f32 %v1720_v9, %v1434_v6  ;;  %v2918_v13 = vadd.f32 %v2917_v11, %v2916_v5  ;;  %v2807_v14 = vpop.f32.mrf.mxu0  ;;  %v1843_v15 = vmax.f32 %v1811_v8, 0.0  ;;  %v3677_v9 = vld [vmem:[%s3800_s5] ss:$0 sm:$0xff] }
 0x15f   : > { %v2919_v16 = vpop.f32.mrf.mxu1 }
 0x160   : > { %v1437_v17 = vadd.f32 %v2918_v13, %v2806_v10  ;;  %v2808_v18 = vpop.f32.mrf.mxu0  ;;  %1875 = vst [vmem:[%s3585_s30 + $0xc8] sm:$0xff] %v1843_v15  ;;  %v1894_v19 = vpack.c.bf16 %v1843_v15, %v1842_v4  ;;  %v1812_v21 = vadd.f32 %v3578_v20, %v1773_v12 }
 0x161   : > { %v2809_v23 = vadd.f32 %v2808_v18, %v2807_v14  ;;  %v2920_v24 = vpop.f32.mrf.mxu1 }
 0x162   : > { %v1774_v25 = vmul.f32 %v1725_v22, %v1437_v17  ;;  %v2921_v26 = vadd.f32 %v2920_v24, %v2919_v16  ;;  %3019 = vmatprep.mubr.bf16.mxu0 %v1894_v19  ;;  %v2810_v27 = vpop.f32.mrf.mxu0  ;;  %v1844_v28 = vmax.f32 %v1812_v21, 0.0 }
 0x163   : > { %v2922_v29 = vpop.f32.mrf.mxu1 }
 0x164   : > { %v1442_v30 = vadd.f32 %v2921_v26, %v2809_v23  ;;  %v2811_v31 = vpop.f32.mrf.mxu0  ;;  %v1813_v32 = vadd.f32 %v3578_v20, %v1774_v25  ;;  %1876 = vst [vmem:[%s3585_s30 + $0xd0] sm:$0xff] %v1844_v28 }
 0x165   : > { %v2812_v34 = vadd.f32 %v2811_v31, %v2810_v27  ;;  %v2923_v35 = vpop.f32.mrf.mxu1 }
 0x166   : > { %v1775_v36 = vmul.f32 %v1730_v33, %v1442_v30  ;;  %v2924_v37 = vadd.f32 %v2923_v35, %v2922_v29  ;;  %v2813_v38 = vpop.f32.mrf.mxu0  ;;  %v1845_v39 = vmax.f32 %v1813_v32, 0.0 }
 0x167   : > { %v2925_v40 = vpop.f32.mrf.mxu1 }
 0x168   : > { %v1445_v41 = vadd.f32 %v2924_v37, %v2812_v34  ;;  %v2814_v42 = vpop.f32.mrf.mxu0  ;;  %1877 = vst [vmem:[%s3585_s30 + $0xd8] sm:$0xff] %v1845_v39  ;;  %v1895_v43 = vpack.c.bf16 %v1845_v39, %v1844_v28  ;;  %v1814_v44 = vadd.f32 %v3578_v20, %v1775_v36 }
 0x169   : > { %v2815_v46 = vadd.f32 %v2814_v42, %v2813_v38  ;;  %v2926_v47 = vpop.f32.mrf.mxu1 }
 0x16a   : > { %v1776_v48 = vmul.f32 %v1735_v45, %v1445_v41  ;;  %v2927_v49 = vadd.f32 %v2926_v47, %v2925_v40  ;;  %3020 = vmatmul.mubr.bf16.gmra.mxu0 %v1895_v43  ;;  %v2816_v50 = vpop.f32.mrf.mxu0  ;;  %v1846_v51 = vmax.f32 %v1814_v44, 0.0 }
 0x16b   : > { %v2928_v52 = vpop.f32.mrf.mxu1 }
 0x16c   : > { %v1450_v53 = vadd.f32 %v2927_v49, %v2815_v46  ;;  %v2817_v54 = vpop.f32.mrf.mxu0  ;;  %v1815_v55 = vadd.f32 %v3578_v20, %v1776_v48  ;;  %1878 = vst [vmem:[%s3585_s30 + $0xe0] sm:$0xff] %v1846_v51 }
 0x16d   : > { %v2818_v57 = vadd.f32 %v2817_v54, %v2816_v50  ;;  %v2929_v58 = vpop.f32.mrf.mxu1 }
 0x16e   : > { %v1777_v59 = vmul.f32 %v1740_v56, %v1450_v53  ;;  %v2930_v60 = vadd.f32 %v2929_v58, %v2928_v52  ;;  %v1847_v61 = vmax.f32 %v1815_v55, 0.0 }
 0x170   : > { %v1453_v62 = vadd.f32 %v2930_v60, %v2818_v57  ;;  %1879 = vst [vmem:[%s3585_s30 + $0xe8] sm:$0xff] %v1847_v61  ;;  %v1896_v63 = vpack.c.bf16 %v1847_v61, %v1846_v51  ;;  %v1816_v0 = vadd.f32 %v3578_v20, %v1777_v59 }
 0x172   : > { %v1778_v2 = vmul.f32 %v1745_v1, %v1453_v62  ;;  %3023 = vmatprep.mubr.bf16.mxu0 %v1896_v63  ;;  %v1848_v3 = vmax.f32 %v1816_v0, 0.0 }
 0x174   : > { %v1817_v4 = vadd.f32 %v3578_v20, %v1778_v2  ;;  %1880 = vst [vmem:[%s3585_s30 + $0xf0] sm:$0xff] %v1848_v3 }
 0x176   : > { %v1849_v5 = vmax.f32 %v1817_v4, 0.0 }
 0x178   : > { %1881 = vst [vmem:[%s3585_s30 + $0xf8] sm:$0xff] %v1849_v5  ;;  %v1897_v6 = vpack.c.bf16 %v1849_v5, %v1848_v3 }
 0x17a   : > { %3024 = vmatmul.mubr.bf16.gmra.mxu0 %v1897_v6 }
 0x1ca   : > { %v2997_v7 = vpop.f32.mrf.mxu0 }
 0x1cb   : > { %v2012_v13 = vadd.f32 %v2997_v7, %v3677_v9 }
 0x1cc   : > { %v2003_v8 = vpop.f32.mrf.mxu0 }
 0x1cd   : > { %v2004_v11 = vadd.f32 %v3677_v9, %v2003_v8  ;;  %v2132_v18 = vmax.f32 %v2012_v13, 0.0 }
 0x1ce   : > { %v2998_v10 = vpop.f32.mrf.mxu0 }
 0x1cf   : > { %v2015_v12 = vadd.f32 %v2998_v10, %v3677_v9  ;;  %v2130_v16 = vmax.f32 %v2004_v11, 0.0 }
 0x1d0   : > { %v2006_v20 = vpop.f32.mrf.mxu0 }
 0x1d1   : > { %v2007_v14 = vadd.f32 %v3677_v9, %v2006_v20  ;;  %v2133_v15 = vmax.f32 %v2015_v12, 0.0 }
 0x1d3   : > { %v2131_v17 = vmax.f32 %v2007_v14, 0.0  ;;  %v2163_v21 = vpack.c.bf16 %v2133_v15, %v2132_v18 }
 0x1d5   : > { %v2162_v19 = vpack.c.bf16 %v2131_v17, %v2130_v16 }
 0x1d7   : > { %3043 = vmatprep.mubr.bf16.mxu1 %v2162_v19 }
 0x1d8   : > { %3044 = vmatmul.mubr.bf16.vlgmr.msra.gmra.mxu1 %v2163_v21 }
 0x1da   : > { %v3001_v22 = vpop.f32.mrf.mxu0 }
 0x1db   : > { %v2028_v27 = vadd.f32 %v3001_v22, %v3677_v9 }
 0x1dc   : > { %v2019_v23 = vpop.f32.mrf.mxu0 }
 0x1dd   : > { %v2020_v25 = vadd.f32 %v3677_v9, %v2019_v23  ;;  %v2136_v33 = vmax.f32 %v2028_v27, 0.0 }
 0x1de   : > { %v3002_v24 = vpop.f32.mrf.mxu0 }
 0x1df   : > { %v2031_v26 = vadd.f32 %v3002_v24, %v3677_v9  ;;  %v2134_v31 = vmax.f32 %v2020_v25, 0.0 }
 0x1e0   : > { %v2022_v28 = vpop.f32.mrf.mxu0 }
 0x1e1   : > { %v2023_v29 = vadd.f32 %v3677_v9, %v2022_v28  ;;  %v2137_v30 = vmax.f32 %v2031_v26, 0.0 }
 0x1e3   : > { %v2135_v32 = vmax.f32 %v2023_v29, 0.0  ;;  %v2165_v35 = vpack.c.bf16 %v2137_v30, %v2136_v33 }
 0x1e5   : > { %v2164_v34 = vpack.c.bf16 %v2135_v32, %v2134_v31 }
 0x1e7   : > { %3047 = vmatprep.mubr.bf16.mxu1 %v2164_v34 }
 0x1e8   : > { %3048 = vmatmul.mubr.bf16.gmra.mxu1 %v2165_v35 }
 0x1ea   : > { %v3005_v36 = vpop.f32.mrf.mxu0 }
 0x1eb   : > { %v2044_v41 = vadd.f32 %v3005_v36, %v3677_v9 }
 0x1ec   : > { %v2035_v37 = vpop.f32.mrf.mxu0 }
 0x1ed   : > { %v2036_v39 = vadd.f32 %v3677_v9, %v2035_v37  ;;  %v2140_v47 = vmax.f32 %v2044_v41, 0.0 }
 0x1ee   : > { %v3006_v38 = vpop.f32.mrf.mxu0 }
 0x1ef   : > { %v2047_v40 = vadd.f32 %v3006_v38, %v3677_v9  ;;  %v2138_v45 = vmax.f32 %v2036_v39, 0.0 }
 0x1f0   : > { %v2038_v42 = vpop.f32.mrf.mxu0 }
 0x1f1   : > { %v2039_v43 = vadd.f32 %v3677_v9, %v2038_v42  ;;  %v2141_v44 = vmax.f32 %v2047_v40, 0.0 }
 0x1f3   : > { %v2139_v46 = vmax.f32 %v2039_v43, 0.0  ;;  %v2167_v49 = vpack.c.bf16 %v2141_v44, %v2140_v47 }
 0x1f5   : > { %v2166_v48 = vpack.c.bf16 %v2139_v46, %v2138_v45 }
 0x1f7   : > { %3051 = vmatprep.mubr.bf16.mxu1 %v2166_v48 }
 0x1f8   : > { %3052 = vmatmul.mubr.bf16.gmra.mxu1 %v2167_v49 }
 0x1fa   : > { %v3009_v50 = vpop.f32.mrf.mxu0 }
 0x1fb   : > { %v2060_v55 = vadd.f32 %v3009_v50, %v3677_v9 }
 0x1fc   : > { %v2051_v51 = vpop.f32.mrf.mxu0 }
 0x1fd   : > { %v2052_v53 = vadd.f32 %v3677_v9, %v2051_v51  ;;  %v2144_v61 = vmax.f32 %v2060_v55, 0.0 }
 0x1fe   : > { %v3010_v52 = vpop.f32.mrf.mxu0 }
 0x1ff   : > { %v2063_v54 = vadd.f32 %v3010_v52, %v3677_v9  ;;  %v2142_v59 = vmax.f32 %v2052_v53, 0.0 }
 0x200   : > { %v2054_v56 = vpop.f32.mrf.mxu0 }
 0x201   : > { %v2055_v57 = vadd.f32 %v3677_v9, %v2054_v56  ;;  %v2145_v58 = vmax.f32 %v2063_v54, 0.0 }
 0x203   : > { %v2143_v60 = vmax.f32 %v2055_v57, 0.0  ;;  %v2169_v63 = vpack.c.bf16 %v2145_v58, %v2144_v61  ;;  %v3714_v57 = vld [vmem:[%s3802_s7] ss:$0 sm:$0xff] }
 0x205   : > { %v2168_v62 = vpack.c.bf16 %v2143_v60, %v2142_v59 }
 0x207   : > { %3055 = vmatprep.mubr.bf16.mxu1 %v2168_v62 }
 0x208   : > { %3056 = vmatmul.mubr.bf16.gmra.mxu1 %v2169_v63 }
 0x20a   : > { %v3013_v0 = vpop.f32.mrf.mxu0 }
 0x20b   : > { %v2076_v5 = vadd.f32 %v3013_v0, %v3677_v9 }
 0x20c   : > { %v2067_v1 = vpop.f32.mrf.mxu0 }
 0x20d   : > { %v2068_v3 = vadd.f32 %v3677_v9, %v2067_v1  ;;  %v2148_v12 = vmax.f32 %v2076_v5, 0.0 }
 0x20e   : > { %v3014_v2 = vpop.f32.mrf.mxu0 }
 0x20f   : > { %v2079_v4 = vadd.f32 %v3014_v2, %v3677_v9  ;;  %v2146_v10 = vmax.f32 %v2068_v3, 0.0 }
 0x210   : > { %v2070_v6 = vpop.f32.mrf.mxu0 }
 0x211   : > { %v2071_v7 = vadd.f32 %v3677_v9, %v2070_v6  ;;  %v2149_v8 = vmax.f32 %v2079_v4, 0.0 }
 0x213   : > { %v2147_v11 = vmax.f32 %v2071_v7, 0.0  ;;  %v2171_v20 = vpack.c.bf16 %v2149_v8, %v2148_v12 }
 0x215   : > { %v2170_v13 = vpack.c.bf16 %v2147_v11, %v2146_v10 }
 0x217   : > { %3059 = vmatprep.mubr.bf16.mxu1 %v2170_v13 }
 0x218   : > { %3060 = vmatmul.mubr.bf16.gmra.mxu1 %v2171_v20 }
 0x21a   : > { %v3017_v14 = vpop.f32.mrf.mxu0 }
 0x21b   : > { %v2092_v19 = vadd.f32 %v3017_v14, %v3677_v9 }
 0x21c   : > { %v2083_v15 = vpop.f32.mrf.mxu0 }
 0x21d   : > { %v2084_v17 = vadd.f32 %v3677_v9, %v2083_v15  ;;  %v2152_v26 = vmax.f32 %v2092_v19, 0.0 }
 0x21e   : > { %v3018_v16 = vpop.f32.mrf.mxu0 }
 0x21f   : > { %v2095_v18 = vadd.f32 %v3018_v16, %v3677_v9  ;;  %v2150_v24 = vmax.f32 %v2084_v17, 0.0 }
 0x220   : > { %v2086_v21 = vpop.f32.mrf.mxu0 }
 0x221   : > { %v2087_v22 = vadd.f32 %v3677_v9, %v2086_v21  ;;  %v2153_v23 = vmax.f32 %v2095_v18, 0.0 }
 0x223   : > { %v2151_v25 = vmax.f32 %v2087_v22, 0.0  ;;  %v2173_v28 = vpack.c.bf16 %v2153_v23, %v2152_v26 }
 0x225   : > { %v2172_v27 = vpack.c.bf16 %v2151_v25, %v2150_v24 }
 0x227   : > { %3063 = vmatprep.mubr.bf16.mxu1 %v2172_v27 }
 0x228   : > { %3064 = vmatmul.mubr.bf16.gmra.mxu1 %v2173_v28 }
 0x22a   : > { %v3021_v29 = vpop.f32.mrf.mxu0 }
 0x22b   : > { %v2108_v34 = vadd.f32 %v3021_v29, %v3677_v9 }
 0x22c   : > { %v2099_v30 = vpop.f32.mrf.mxu0 }
 0x22d   : > { %v2100_v32 = vadd.f32 %v3677_v9, %v2099_v30  ;;  %v2156_v40 = vmax.f32 %v2108_v34, 0.0 }
 0x22e   : > { %v3022_v31 = vpop.f32.mrf.mxu0 }
 0x22f   : > { %v2111_v33 = vadd.f32 %v3022_v31, %v3677_v9  ;;  %v2154_v38 = vmax.f32 %v2100_v32, 0.0 }
 0x230   : > { %v2102_v35 = vpop.f32.mrf.mxu0 }
 0x231   : > { %v2103_v36 = vadd.f32 %v3677_v9, %v2102_v35  ;;  %v2157_v37 = vmax.f32 %v2111_v33, 0.0 }
 0x233   : > { %v2155_v39 = vmax.f32 %v2103_v36, 0.0  ;;  %v2175_v42 = vpack.c.bf16 %v2157_v37, %v2156_v40 }
 0x235   : > { %v2174_v41 = vpack.c.bf16 %v2155_v39, %v2154_v38 }
 0x237   : > { %3067 = vmatprep.mubr.bf16.mxu1 %v2174_v41 }
 0x238   : > { %3068 = vmatmul.mubr.bf16.gmra.mxu1 %v2175_v42 }
 0x23a   : > { %v3025_v43 = vpop.f32.mrf.mxu0 }
 0x23b   : > { %v2124_v48 = vadd.f32 %v3025_v43, %v3677_v9 }
 0x23c   : > { %v2115_v44 = vpop.f32.mrf.mxu0 }
 0x23d   : > { %v2116_v46 = vadd.f32 %v3677_v9, %v2115_v44  ;;  %v2160_v54 = vmax.f32 %v2124_v48, 0.0 }
 0x23e   : > { %v3026_v45 = vpop.f32.mrf.mxu0 }
 0x23f   : > { %v2127_v47 = vadd.f32 %v3026_v45, %v3677_v9  ;;  %v2158_v52 = vmax.f32 %v2116_v46, 0.0 }
 0x240   : > { %v2118_v49 = vpop.f32.mrf.mxu0 }
 0x241   : > { %v2119_v50 = vadd.f32 %v3677_v9, %v2118_v49  ;;  %v2161_v51 = vmax.f32 %v2127_v47, 0.0 }
 0x243   : > { %v2159_v53 = vmax.f32 %v2119_v50, 0.0  ;;  %v2177_v56 = vpack.c.bf16 %v2161_v51, %v2160_v54 }
 0x245   : > { %v2176_v55 = vpack.c.bf16 %v2159_v53, %v2158_v52 }
 0x247   : > { %3071 = vmatprep.mubr.bf16.mxu1 %v2176_v55 }
 0x248   : > { %3072 = vmatmul.mubr.bf16.gmra.mxu1 %v2177_v56 }
 0x298   : > { %v3045_v9 = vpop.f32.mrf.mxu1 }
 0x299   : > { %v2292_v58 = vadd.f32 %v3045_v9, %v3714_v57 }
 0x29a   : > { %v2283_v59 = vpop.f32.mrf.mxu1 }
 0x29b   : > { %2412 = vst [vmem:[%s3720_s26 + $0x10] sm:$0xff] %v2292_v58  ;;  %v2284_v60 = vadd.f32 %v3714_v57, %v2283_v59 }
 0x29c   : > { %v3046_v61 = vpop.f32.mrf.mxu1 }
 0x29d   : > { %2410 = vst [vmem:[%s3720_s26] sm:$0xff] %v2284_v60  ;;  %v2295_v62 = vadd.f32 %v3046_v61, %v3714_v57 }
 0x29e   : > { %v2286_v63 = vpop.f32.mrf.mxu1 }
 0x29f   : > { %2413 = vst [vmem:[%s3720_s26 + $0x18] sm:$0xff] %v2295_v62  ;;  %v2287_v0 = vadd.f32 %v3714_v57, %v2286_v63 }
 0x2a1   : > { %2411 = vst [vmem:[%s3720_s26 + $0x8] sm:$0xff] %v2287_v0 }
 0x2a8   : > { %v3049_v1 = vpop.f32.mrf.mxu1 }
 0x2a9   : > { %v2308_v2 = vadd.f32 %v3049_v1, %v3714_v57 }
 0x2aa   : > { %v2299_v3 = vpop.f32.mrf.mxu1 }
 0x2ab   : > { %2416 = vst [vmem:[%s3720_s26 + $0x30] sm:$0xff] %v2308_v2  ;;  %v2300_v4 = vadd.f32 %v3714_v57, %v2299_v3 }
 0x2ac   : > { %v3050_v5 = vpop.f32.mrf.mxu1 }
 0x2ad   : > { %2414 = vst [vmem:[%s3720_s26 + $0x20] sm:$0xff] %v2300_v4  ;;  %v2311_v6 = vadd.f32 %v3050_v5, %v3714_v57 }
 0x2ae   : > { %v2302_v7 = vpop.f32.mrf.mxu1 }
 0x2af   : > { %2417 = vst [vmem:[%s3720_s26 + $0x38] sm:$0xff] %v2311_v6  ;;  %v2303_v8 = vadd.f32 %v3714_v57, %v2302_v7 }
 0x2b1   : > { %2415 = vst [vmem:[%s3720_s26 + $0x28] sm:$0xff] %v2303_v8 }
 0x2b8   : > { %v3053_v10 = vpop.f32.mrf.mxu1 }
 0x2b9   : > { %v2324_v11 = vadd.f32 %v3053_v10, %v3714_v57 }
 0x2ba   : > { %v2315_v12 = vpop.f32.mrf.mxu1 }
 0x2bb   : > { %2420 = vst [vmem:[%s3720_s26 + $0x50] sm:$0xff] %v2324_v11  ;;  %v2316_v13 = vadd.f32 %v3714_v57, %v2315_v12 }
 0x2bc   : > { %v3054_v20 = vpop.f32.mrf.mxu1 }
 0x2bd   : > { %2418 = vst [vmem:[%s3720_s26 + $0x40] sm:$0xff] %v2316_v13  ;;  %v2327_v14 = vadd.f32 %v3054_v20, %v3714_v57 }
 0x2be   : > { %v2318_v15 = vpop.f32.mrf.mxu1 }
 0x2bf   : > { %2421 = vst [vmem:[%s3720_s26 + $0x58] sm:$0xff] %v2327_v14  ;;  %v2319_v16 = vadd.f32 %v3714_v57, %v2318_v15 }
 0x2c1   : > { %2419 = vst [vmem:[%s3720_s26 + $0x48] sm:$0xff] %v2319_v16 }
 0x2c8   : > { %v3057_v17 = vpop.f32.mrf.mxu1 }
 0x2c9   : > { %v2340_v18 = vadd.f32 %v3057_v17, %v3714_v57 }
 0x2ca   : > { %v2331_v19 = vpop.f32.mrf.mxu1 }
 0x2cb   : > { %2424 = vst [vmem:[%s3720_s26 + $0x70] sm:$0xff] %v2340_v18  ;;  %v2332_v21 = vadd.f32 %v3714_v57, %v2331_v19 }
 0x2cc   : > { %v3058_v22 = vpop.f32.mrf.mxu1 }
 0x2cd   : > { %2422 = vst [vmem:[%s3720_s26 + $0x60] sm:$0xff] %v2332_v21  ;;  %v2343_v23 = vadd.f32 %v3058_v22, %v3714_v57 }
 0x2ce   : > { %v2334_v24 = vpop.f32.mrf.mxu1 }
 0x2cf   : > { %2425 = vst [vmem:[%s3720_s26 + $0x78] sm:$0xff] %v2343_v23  ;;  %v2335_v25 = vadd.f32 %v3714_v57, %v2334_v24 }
 0x2d1   : > { %2423 = vst [vmem:[%s3720_s26 + $0x68] sm:$0xff] %v2335_v25 }
 0x2d8   : > { %v3061_v26 = vpop.f32.mrf.mxu1 }
 0x2d9   : > { %v2356_v27 = vadd.f32 %v3061_v26, %v3714_v57 }
 0x2da   : > { %v2347_v28 = vpop.f32.mrf.mxu1 }
 0x2db   : > { %2428 = vst [vmem:[%s3720_s26 + $0x90] sm:$0xff] %v2356_v27  ;;  %v2348_v29 = vadd.f32 %v3714_v57, %v2347_v28 }
 0x2dc   : > { %v3062_v30 = vpop.f32.mrf.mxu1 }
 0x2dd   : > { %2426 = vst [vmem:[%s3720_s26 + $0x80] sm:$0xff] %v2348_v29  ;;  %v2359_v31 = vadd.f32 %v3062_v30, %v3714_v57 }
 0x2de   : > { %v2350_v32 = vpop.f32.mrf.mxu1 }
 0x2df   : > { %2429 = vst [vmem:[%s3720_s26 + $0x98] sm:$0xff] %v2359_v31  ;;  %v2351_v33 = vadd.f32 %v3714_v57, %v2350_v32 }
 0x2e1   : > { %2427 = vst [vmem:[%s3720_s26 + $0x88] sm:$0xff] %v2351_v33 }
 0x2e8   : > { %v3065_v34 = vpop.f32.mrf.mxu1 }
 0x2e9   : > { %v2372_v35 = vadd.f32 %v3065_v34, %v3714_v57 }
 0x2ea   : > { %v2363_v36 = vpop.f32.mrf.mxu1 }
 0x2eb   : > { %2432 = vst [vmem:[%s3720_s26 + $0xb0] sm:$0xff] %v2372_v35  ;;  %v2364_v37 = vadd.f32 %v3714_v57, %v2363_v36 }
 0x2ec   : > { %v3066_v38 = vpop.f32.mrf.mxu1 }
 0x2ed   : > { %2430 = vst [vmem:[%s3720_s26 + $0xa0] sm:$0xff] %v2364_v37  ;;  %v2375_v39 = vadd.f32 %v3066_v38, %v3714_v57 }
 0x2ee   : > { %v2366_v40 = vpop.f32.mrf.mxu1 }
 0x2ef   : > { %2433 = vst [vmem:[%s3720_s26 + $0xb8] sm:$0xff] %v2375_v39  ;;  %v2367_v41 = vadd.f32 %v3714_v57, %v2366_v40 }
 0x2f1   : > { %2431 = vst [vmem:[%s3720_s26 + $0xa8] sm:$0xff] %v2367_v41 }
 0x2f8   : > { %v3069_v42 = vpop.f32.mrf.mxu1 }
 0x2f9   : > { %v2388_v43 = vadd.f32 %v3069_v42, %v3714_v57 }
 0x2fa   : > { %v2379_v44 = vpop.f32.mrf.mxu1 }
 0x2fb   : > { %2436 = vst [vmem:[%s3720_s26 + $0xd0] sm:$0xff] %v2388_v43  ;;  %v2380_v45 = vadd.f32 %v3714_v57, %v2379_v44 }
 0x2fc   : > { %v3070_v46 = vpop.f32.mrf.mxu1 }
 0x2fd   : > { %2434 = vst [vmem:[%s3720_s26 + $0xc0] sm:$0xff] %v2380_v45  ;;  %v2391_v47 = vadd.f32 %v3070_v46, %v3714_v57 }
 0x2fe   : > { %v2382_v48 = vpop.f32.mrf.mxu1 }
 0x2ff   : > { %2437 = vst [vmem:[%s3720_s26 + $0xd8] sm:$0xff] %v2391_v47  ;;  %v2383_v49 = vadd.f32 %v3714_v57, %v2382_v48 }
 0x301   : > { %2435 = vst [vmem:[%s3720_s26 + $0xc8] sm:$0xff] %v2383_v49 }
 0x308   : > { %v3073_v50 = vpop.f32.mrf.mxu1 }
 0x309   : > { %v2404_v51 = vadd.f32 %v3073_v50, %v3714_v57 }
 0x30a   : > { %v2395_v52 = vpop.f32.mrf.mxu1 }
 0x30b   : > { %2440 = vst [vmem:[%s3720_s26 + $0xf0] sm:$0xff] %v2404_v51  ;;  %v2396_v53 = vadd.f32 %v3714_v57, %v2395_v52 }
 0x30c   : > { %v3074_v54 = vpop.f32.mrf.mxu1 }
 0x30d   : > { %2438 = vst [vmem:[%s3720_s26 + $0xe0] sm:$0xff] %v2396_v53  ;;  %v2407_v55 = vadd.f32 %v3074_v54, %v3714_v57 }
 0x30e   : > { %v2398_v56 = vpop.f32.mrf.mxu1 }
 0x30f   : > { %2441 = vst [vmem:[%s3720_s26 + $0xf8] sm:$0xff] %v2407_v55  ;;  %v2399_v9 = vadd.f32 %v3714_v57, %v2398_v56 }
 0x311   : > { %2439 = vst [vmem:[%s3720_s26 + $0xe8] sm:$0xff] %v2399_v9 }
 0x312 PF: > { %s20_s11 = sadd.s32 1, %s3268_s11   ;;  %s3805_s30 = smov %s3264_s10 }
 0x313   : > { %p17_p5 = scmp.ge.s32.totalorder %s20_s11, 4   ;;  %s3806_s10 = smov %s3808_s12 }
 0x315   :  { %19 = sbr.rel (!%p17_p5) target bundleno = 2 (0x2), region = 108 }

</bundles_post_ra>
